<compile_context>
chip_gen: v6e
topology: v6e:2x2x1
jax: 0.10.0
libtpu: 0.0.40
codegen_flags: <defaults>
</compile_context>

<pallas_src>
import functools

import jax
import jax.numpy as jnp
from jax.experimental import pallas as pl
from jax.experimental.pallas import tpu as pltpu


def _cdiv(a, b):
    return -(-a // b)


def _round_up(x, m):
    return _cdiv(x, m) * m


def _default_core_split():
    """Number of TensorCores per chip (2 on dual-TC parts, else 1). Best effort."""
    objs = []
    try:
        objs.append(pltpu.get_tpu_info())
    except Exception:
        pass
    try:
        objs.append(jax.devices()[0])
    except Exception:
        pass
    for obj in objs:
        for attr in ("num_tensorcores", "tensorcore_count", "num_cores_per_chip",
                     "cores_per_chip", "num_cores", "core_count"):
            v = getattr(obj, attr, None)
            if isinstance(v, int) and v >= 1:
                return max(1, min(int(v), 2))
    return 1


def _iou_focal_partials_kernel(pred_ref, aux_ref, acc_ref, *, gamma, alpha,
                               eta, n_valid, tile, n_inner, needs_mask):
    """One (C, T) tile of element-wise focal loss + per-lane partial sums.

    acc_ref: (1, 8, T) f32 output block, resident across the inner grid axis:
      row 0: sum over classes of loss * t                (pos, unweighted)
      row 1: sum over classes of loss * t * iw           (pos, iou-weighted)
      row 2: sum over classes of loss * t * iw * lw      (pos, label-weighted)
      row 3: sum over classes of loss * (1 - t) * lw     (neg, label-weighted)
      rows 4..7 duplicate 0..3 (keeps the += full-vreg aligned, unmasked).
    """
    s = pl.program_id(0)
    i = pl.program_id(1)

    @pl.when(i == 0)
    def _init():
        acc_ref[...] = jnp.zeros_like(acc_ref)

    x = pred_ref[...].astype(jnp.float32)            # (C, T) logits
    lab = aux_ref[0:1, :].astype(jnp.int32)          # (1, T) labels (0 = background)
    lw = aux_ref[1:2, :]                             # (1, T) label weights (f32)
    iou = aux_ref[2:3, :]                            # (1, T) ious (f32)

    c, t_n = x.shape

    # one-hot target rebuilt in-VMEM: class k in 1..C -> column k-1
    cls_id = jax.lax.broadcasted_iota(jnp.int32, (c, t_n), 0) + 1
    t = (lab == cls_id).astype(jnp.float32)          # (C, T)

    # sigmoid + numerically-stable BCE-with-logits sharing a single exp(-|x|);
    # approximate reciprocal keeps the denominator on the EUP slot.
    e = jnp.exp(-jnp.abs(x))
    inv_1pe = pl.reciprocal(1.0 + e, approx=True)
    p = jnp.where(x >= 0.0, inv_1pe, e * inv_1pe)    # sigmoid(x)
    bce = jnp.maximum(x, 0.0) - x * t + jnp.log1p(e)

    pt = p + t * (1.0 - 2.0 * p)                     # == (1-p)*t + p*(1-t)
    if gamma == 2.0:
        pt_pow = pt * pt                             # no float pow
    elif gamma == float(int(gamma)) and gamma >= 0.0:
        pt_pow = jax.lax.integer_pow(pt, int(gamma))
    else:
        pt_pow = pt ** gamma
    alpha_t = (1.0 - alpha) + (2.0 * alpha - 1.0) * t
    loss = bce * (alpha_t * pt_pow)                  # (C, T)

    # Only two cross-sublane reductions; per-anchor iw/lw are constant over the
    # class axis so they are applied to the reduced (1, T) rows below.
    s_pos = jnp.sum(loss * t, axis=0, keepdims=True)     # (1, T)
    s_all = jnp.sum(loss, axis=0, keepdims=True)         # (1, T)
    iw = iou if eta == 1.0 else iou ** eta                # (1, T)

    if needs_mask:
        # anchors past n_valid (ragged tail or clamped overhang steps) -> 0
        base = (s * n_inner + i) * tile
        lane = jax.lax.broadcasted_iota(jnp.int32, (1, t_n), 1)
        valid = (base + lane) < n_valid
        zero = jnp.zeros_like(s_pos)
        s_pos = jnp.where(valid, s_pos, zero)
        s_all = jnp.where(valid, s_all, zero)
        lw = jnp.where(valid, lw, zero)
        iw = jnp.where(valid, iw, zero)

    r0 = s_pos                      # sum_c loss * t
    r1 = s_pos * iw                 # sum_c loss * t * iw
    r2 = r1 * lw                    # sum_c loss * t * iw * lw
    r3 = (s_all - s_pos) * lw       # sum_c loss * (1 - t) * lw

    # full 8-sublane, lane-dense update -> unmasked vreg-aligned accumulate
    upd = jnp.concatenate([r0, r1, r2, r3, r0, r1, r2, r3], axis=0)  # (8, T)
    acc_ref[...] += upd[None]


def iou_balanced_sigmoid_focal_loss(cls_score, label, label_weight, iou, *,
                                    gamma=2.0, alpha=0.25, eta=1.0,
                                    avg_factor=None, tile_n=8192,
                                    n_core_split=None, class_major=False):
    """Pallas-backed criterion. cls_score: (N, C) (or (C, N) if class_major)."""
    if class_major:
        c, n = cls_score.shape
        logits_t = cls_score                              # already lane-major
    else:
        n, c = cls_score.shape
        # TODO(synk): have upstream producers emit class-major (C, N) logits so
        # this extra HBM transpose pass disappears entirely.
        logits_t = jnp.transpose(cls_score)               # (C, N)

    # pack the three per-anchor aux vectors into one (3, N) f32 array (1 DMA stream)
    aux = jnp.stack([label.astype(jnp.float32),
                     label_weight.astype(jnp.float32),
                     iou.astype(jnp.float32)], axis=0)

    # core split first (both v7x TensorCores always get work), tile second
    split = int(n_core_split) if n_core_split else _default_core_split()
    split = max(1, split)

    itemsize = jnp.dtype(logits_t.dtype).itemsize
    per_anchor_bytes = 2 * c * itemsize + 2 * 3 * 4 + 8 * 4   # dbl-buf inputs + acc
    vmem_budget = 12 * 1024 * 1024                             # safe on every generation
    tile_cap = max(128, ((vmem_budget // per_anchor_bytes) // 128) * 128)
    tile = min(_round_up(int(tile_n), 128), tile_cap,
               _round_up(_cdiv(n, split), 128))

    n_blocks = _cdiv(n, tile)              # every real block starts inside [0, n)
    n_inner = _cdiv(n_blocks, split)
    needs_mask = (split * n_inner * tile != n)

    if split * n_inner == n_blocks:
        in_idx = lambda s, i: (0, s * n_inner + i)
    else:
        # overhanging grid steps re-read the last in-bounds block; their lanes
        # are masked to zero inside the kernel.
        in_idx = lambda s, i: (0, jnp.minimum(s * n_inner + i, n_blocks - 1))

    kernel = functools.partial(
        _iou_focal_partials_kernel, gamma=float(gamma), alpha=float(alpha),
        eta=float(eta), n_valid=n, tile=tile, n_inner=n_inner,
        needs_mask=needs_mask)

    cost = pl.CostEstimate(
        flops=30 * n * c,
        transcendentals=3 * n * c,                         # exp, log1p, reciprocal
        bytes_accessed=int(logits_t.size * itemsize + aux.size * 4
                           + split * 8 * tile * 4))

    partials = pl.pallas_call(
        kernel,
        out_shape=jax.ShapeDtypeStruct((split, 8, tile), jnp.float32),
        grid=(split, n_inner),
        in_specs=[
            pl.BlockSpec((c, tile), in_idx),               # logits (C, T), lane-dense
            pl.BlockSpec((3, tile), in_idx),               # packed aux (label, lw, iou)
        ],
        out_specs=pl.BlockSpec((1, 8, tile), lambda s, i: (s, 0, 0)),
        compiler_params=pltpu.CompilerParams(
            dimension_semantics=("parallel", "arbitrary")),
        cost_estimate=cost,
    )(logits_t, aux)

    # tiny scalar epilogue in plain JAX (rows 4..7 are duplicates -> ignored)
    sums = jnp.sum(partials[:, :4, :], axis=(0, 2))        # (4,)
    pos_sum, pos_w_sum, pos_w_lw_sum, neg_lw_sum = (sums[0], sums[1],
                                                    sums[2], sums[3])
    normalizer = pos_sum / (pos_w_sum + 1e-6)
    total = neg_lw_sum + normalizer * pos_w_lw_sum

    if avg_factor is None:
        return total / (n * c)          # reduction='mean' over original elements
    return total / avg_factor


class IOUbalancedSigmoidFocalLoss:
    """JAX/Pallas port of the PyTorch module's forward pass."""

    def __init__(self, use_sigmoid=False, loss_weight=1.0, gamma=2.0,
                 alpha=0.25, eta=1.0):
        assert use_sigmoid is True, 'Only sigmoid focaloss supported now.'
        self.use_sigmoid = use_sigmoid
        # NOTE: the reference forward() stores loss_weight but never applies it.
        self.loss_weight = loss_weight
        self.gamma = gamma
        self.alpha = alpha
        self.eta = eta

    def __call__(self, cls_score, label, label_weight, iou, avg_factor=None,
                 tile_n=8192, n_core_split=None, class_major=False):
        return iou_balanced_sigmoid_focal_loss(
            cls_score, label, label_weight, iou,
            gamma=self.gamma, alpha=self.alpha, eta=self.eta,
            avg_factor=avg_factor, tile_n=tile_n, n_core_split=n_core_split,
            class_major=class_major)


def _reference_loss(pred, tgt, lw, iou, gamma, alpha, eta, avg_factor):
    """Pure-JAX reference for the correctness check."""
    p = jax.nn.sigmoid(pred)
    pt = (1 - p) * tgt + p * (1 - tgt)
    fw = (alpha * tgt + (1 - alpha) * (1 - tgt)) * pt ** gamma
    bce = jnp.maximum(pred, 0) - pred * tgt + jnp.log1p(jnp.exp(-jnp.abs(pred)))
    loss = bce * fw
    iw = iou[:, None] ** eta
    norm = jnp.sum(loss * tgt) / (jnp.sum(loss * tgt * iw) + 1e-6)
    lw2 = lw[:, None]
    total = jnp.sum(loss * (1 - tgt) * lw2) + norm * jnp.sum(loss * tgt * iw * lw2)
    return total / avg_factor


if __name__ == "__main__":
    key = jax.random.PRNGKey(0)
    k1, k2, k3 = jax.random.split(key, 3)

    N, C = 1000, 20                      # small, non-multiple-of-128 anchor count
    cls_score = jax.random.normal(k1, (N, C), dtype=jnp.float32)
    # ~25% positives: labels in {1..C}; rest background (0)
    label = jax.random.randint(k2, (N,), 0, C + 1)
    label = jnp.where(jax.random.uniform(k3, (N,)) < 0.25, label, 0)
    label_weight = jnp.ones((N,), dtype=jnp.float32)
    iou = jax.random.uniform(jax.random.fold_in(key, 7), (N,),
                             minval=0.1, maxval=1.0, dtype=jnp.float32)
    num_pos = jnp.maximum(jnp.sum(label > 0), 1).astype(jnp.float32)

    loss_mod = IOUbalancedSigmoidFocalLoss(use_sigmoid=True, loss_weight=1.0,
                                           gamma=2.0, alpha=0.25, eta=1.0)

    # pure-JAX reference
    tgt = jax.nn.one_hot(label, C + 1, dtype=jnp.float32)[:, 1:]
    ref = _reference_loss(cls_score, tgt, label_weight, iou,
                          2.0, 0.25, 1.0, num_pos)

    # 1) defaults: auto core split, large tile, ragged tail masked in-kernel
    out1 = jax.block_until_ready(
        loss_mod(cls_score, label, label_weight, iou, avg_factor=num_pos))
    assert jnp.allclose(out1, ref, rtol=2e-3, atol=1e-5), (out1, ref)

    # 2) small tiles + explicit 2-way split: exercises inner-grid accumulation
    #    and the resident output accumulator
    out2 = jax.block_until_ready(
        loss_mod(cls_score, label, label_weight, iou, avg_factor=num_pos,
                 tile_n=128, n_core_split=2))
    assert jnp.allclose(out2, ref, rtol=2e-3, atol=1e-5), (out2, ref)

    # 3) 3-way split with overhanging grid steps: exercises the clamped
    #    index_map and fully-masked out-of-range steps
    out3 = jax.block_until_ready(
        loss_mod(cls_score, label, label_weight, iou, avg_factor=num_pos,
                 tile_n=256, n_core_split=3))
    assert jnp.allclose(out3, ref, rtol=2e-3, atol=1e-5), (out3, ref)

    # 4) exact-coverage shape: exercises the no-mask fast path
    N2 = 512
    cs2, lb2, lw2, io2 = cls_score[:N2], label[:N2], label_weight[:N2], iou[:N2]
    np2 = jnp.maximum(jnp.sum(lb2 > 0), 1).astype(jnp.float32)
    tgt2 = jax.nn.one_hot(lb2, C + 1, dtype=jnp.float32)[:, 1:]
    ref2 = _reference_loss(cs2, tgt2, lw2, io2, 2.0, 0.25, 1.0, np2)
    out4 = jax.block_until_ready(
        loss_mod(cs2, lb2, lw2, io2, avg_factor=np2, tile_n=256, n_core_split=2))
    assert jnp.allclose(out4, ref2, rtol=2e-3, atol=1e-5), (out4, ref2)

    print("KERNEL_OK")
</pallas_src>

<mosaic_0001>
module attributes {stable_mosaic.version = 11 : i64} {
  func.func @_iou_focal_partials_kernel(%arg0: i32, %arg1: i32, %arg2: memref<20x1024xf32, #tpu.memory_space<vmem>>, %arg3: memref<3x1024xf32, #tpu.memory_space<vmem>>, %arg4: memref<1x8x1024xf32, #tpu.memory_space<vmem>>) attributes {dimension_semantics = [#tpu.dimension_semantics<parallel>, #tpu.dimension_semantics<arbitrary>], iteration_bounds = array<i64: 1, 1>, scalar_prefetch = 0 : i64, scratch_operands = 0 : i64, tpu.core_type = #tpu.core_type<tc>, window_params = [{transform_indices = @transform_0, window_bounds = array<i64: 20, 1024>}, {transform_indices = @transform_1, window_bounds = array<i64: 3, 1024>}, {transform_indices = @transform_2, window_bounds = array<i64: 1, 8, 1024>}]} {
    %c0_i32 = arith.constant 0 : i32
    %0 = arith.cmpi eq, %arg1, %c0_i32 : i32
    %1 = arith.extui %0 : i1 to i32
    %c0_i32_0 = arith.constant 0 : i32
    %2 = arith.cmpi ne, %1, %c0_i32_0 : i32
    scf.if %2 {
      %cst_23 = arith.constant 0.000000e+00 : f32
      %72 = vector.broadcast %cst_23 : f32 to vector<1x8x1024xf32>
      %c0_24 = arith.constant 0 : index
      %c0_25 = arith.constant 0 : index
      %c0_26 = arith.constant 0 : index
      %73 = vector.load %arg4[%c0_24, %c0_25, %c0_26] : memref<1x8x1024xf32, #tpu.memory_space<vmem>>, vector<1x8x1024xf32>
      tpu.vector_store %arg4[%c0_24, %c0_25, %c0_26], %72 {strides = array<i32>} : memref<1x8x1024xf32, #tpu.memory_space<vmem>>, vector<1x8x1024xf32>,
    } else {
    }
    %c0 = arith.constant 0 : index
    %c0_1 = arith.constant 0 : index
    %3 = vector.load %arg2[%c0, %c0_1] : memref<20x1024xf32, #tpu.memory_space<vmem>>, vector<20x1024xf32>
    %c0_2 = arith.constant 0 : index
    %c0_3 = arith.constant 0 : index
    %4 = vector.load %arg3[%c0_2, %c0_3] : memref<3x1024xf32, #tpu.memory_space<vmem>>, vector<1x1024xf32>
    %5 = arith.fptosi %4 : vector<1x1024xf32> to vector<1x1024xi32>
    %c1 = arith.constant 1 : index
    %c0_4 = arith.constant 0 : index
    %6 = vector.load %arg3[%c1, %c0_4] : memref<3x1024xf32, #tpu.memory_space<vmem>>, vector<1x1024xf32>
    %c2 = arith.constant 2 : index
    %c0_5 = arith.constant 0 : index
    %7 = vector.load %arg3[%c2, %c0_5] : memref<3x1024xf32, #tpu.memory_space<vmem>>, vector<1x1024xf32>
    %8 = tpu.iota {dimensions = array<i32: 0>} : vector<20x1024xi32>
    %c1_i32 = arith.constant 1 : i32
    %9 = vector.broadcast %c1_i32 : i32 to vector<20x1024xi32>
    %10 = arith.addi %8, %9 : vector<20x1024xi32>
    %11 = vector.broadcast %5 : vector<1x1024xi32> to vector<20x1024xi32>
    %12 = arith.cmpi eq, %11, %10 : vector<20x1024xi32>
    %13 = arith.extui %12 : vector<20x1024xi1> to vector<20x1024xi32>
    %14 = arith.sitofp %13 : vector<20x1024xi32> to vector<20x1024xf32>
    %15 = math.absf %3 : vector<20x1024xf32>
    %cst = arith.constant 0.000000e+00 : f32
    %16 = vector.broadcast %cst : f32 to vector<20x1024xf32>
    %17 = arith.subf %16, %15 : vector<20x1024xf32>
    %18 = math.exp %17 : vector<20x1024xf32>
    %cst_6 = arith.constant 1.000000e+00 : f32
    %19 = vector.broadcast %cst_6 : f32 to vector<20x1024xf32>
    %20 = arith.addf %19, %18 : vector<20x1024xf32>
    %21 = tpu.reciprocal %20 {approx = true} : vector<20x1024xf32> -> vector<20x1024xf32>
    %cst_7 = arith.constant 0.000000e+00 : f32
    %22 = vector.broadcast %cst_7 : f32 to vector<20x1024xf32>
    %23 = arith.cmpf oge, %3, %22 : vector<20x1024xf32>
    %24 = arith.mulf %18, %21 : vector<20x1024xf32>
    %25 = arith.select %23, %21, %24 : vector<20x1024xi1>, vector<20x1024xf32>
    %cst_8 = arith.constant 0.000000e+00 : f32
    %26 = vector.broadcast %cst_8 : f32 to vector<20x1024xf32>
    %27 = arith.maximumf %3, %26 : vector<20x1024xf32>
    %28 = arith.mulf %3, %14 : vector<20x1024xf32>
    %29 = arith.subf %27, %28 : vector<20x1024xf32>
    %30 = math.log1p %18 : vector<20x1024xf32>
    %31 = arith.addf %29, %30 : vector<20x1024xf32>
    %cst_9 = arith.constant 2.000000e+00 : f32
    %32 = vector.broadcast %cst_9 : f32 to vector<20x1024xf32>
    %33 = arith.mulf %32, %25 : vector<20x1024xf32>
    %cst_10 = arith.constant 1.000000e+00 : f32
    %34 = vector.broadcast %cst_10 : f32 to vector<20x1024xf32>
    %35 = arith.subf %34, %33 : vector<20x1024xf32>
    %36 = arith.mulf %14, %35 : vector<20x1024xf32>
    %37 = arith.addf %25, %36 : vector<20x1024xf32>
    %38 = arith.mulf %37, %37 : vector<20x1024xf32>
    %cst_11 = arith.constant -5.000000e-01 : f32
    %39 = vector.broadcast %cst_11 : f32 to vector<20x1024xf32>
    %40 = arith.mulf %39, %14 : vector<20x1024xf32>
    %cst_12 = arith.constant 7.500000e-01 : f32
    %41 = vector.broadcast %cst_12 : f32 to vector<20x1024xf32>
    %42 = arith.addf %41, %40 : vector<20x1024xf32>
    %43 = arith.mulf %42, %38 : vector<20x1024xf32>
    %44 = arith.mulf %31, %43 : vector<20x1024xf32>
    %45 = arith.mulf %44, %14 : vector<20x1024xf32>
    %cst_13 = arith.constant dense<0.000000e+00> : vector<1024xf32>
    %46 = vector.multi_reduction <add>, %45, %cst_13 [0] : vector<20x1024xf32> to vector<1024xf32>
    %47 = vector.shape_cast %46 : vector<1024xf32> to vector<1x1024xf32>
    %cst_14 = arith.constant dense<0.000000e+00> : vector<1024xf32>
    %48 = vector.multi_reduction <add>, %44, %cst_14 [0] : vector<20x1024xf32> to vector<1024xf32>
    %49 = vector.shape_cast %48 : vector<1024xf32> to vector<1x1024xf32>
    %c1_i32_15 = arith.constant 1 : i32
    %50 = arith.muli %arg0, %c1_i32_15 : i32
    %51 = arith.addi %50, %arg1 : i32
    %c1024_i32 = arith.constant 1024 : i32
    %52 = arith.muli %51, %c1024_i32 : i32
    %53 = tpu.iota {dimensions = array<i32: 1>} : vector<1x1024xi32>
    %54 = vector.broadcast %52 : i32 to vector<1x1024xi32>
    %55 = arith.addi %54, %53 : vector<1x1024xi32>
    %c1000_i32 = arith.constant 1000 : i32
    %56 = vector.broadcast %c1000_i32 : i32 to vector<1x1024xi32>
    %57 = arith.cmpi slt, %55, %56 : vector<1x1024xi32>
    %cst_16 = arith.constant 0.000000e+00 : f32
    %58 = vector.broadcast %cst_16 : f32 to vector<1x1024xf32>
    %59 = arith.select %57, %47, %58 : vector<1x1024xi1>, vector<1x1024xf32>
    %60 = arith.select %57, %49, %58 : vector<1x1024xi1>, vector<1x1024xf32>
    %61 = arith.select %57, %6, %58 : vector<1x1024xi1>, vector<1x1024xf32>
    %62 = arith.select %57, %7, %58 : vector<1x1024xi1>, vector<1x1024xf32>
    %63 = arith.mulf %59, %62 : vector<1x1024xf32>
    %64 = arith.mulf %63, %61 : vector<1x1024xf32>
    %65 = arith.subf %60, %59 : vector<1x1024xf32>
    %66 = arith.mulf %65, %61 : vector<1x1024xf32>
    %67 = tpu.concatenate %59, %63, %64, %66, %59, %63, %64, %66 in 0 : vector<1x1024xf32>, vector<1x1024xf32>, vector<1x1024xf32>, vector<1x1024xf32>, vector<1x1024xf32>, vector<1x1024xf32>, vector<1x1024xf32>, vector<1x1024xf32> -> vector<8x1024xf32>
    %c0_17 = arith.constant 0 : index
    %c0_18 = arith.constant 0 : index
    %c0_19 = arith.constant 0 : index
    %68 = vector.load %arg4[%c0_17, %c0_18, %c0_19] : memref<1x8x1024xf32, #tpu.memory_space<vmem>>, vector<1x8x1024xf32>
    %69 = vector.shape_cast %67 : vector<8x1024xf32> to vector<1x8x1024xf32>
    %70 = arith.addf %68, %69 : vector<1x8x1024xf32>
    %c0_20 = arith.constant 0 : index
    %c0_21 = arith.constant 0 : index
    %c0_22 = arith.constant 0 : index
    %71 = vector.load %arg4[%c0_20, %c0_21, %c0_22] : memref<1x8x1024xf32, #tpu.memory_space<vmem>>, vector<1x8x1024xf32>
    tpu.vector_store %arg4[%c0_20, %c0_21, %c0_22], %70 {strides = array<i32>} : memref<1x8x1024xf32, #tpu.memory_space<vmem>>, vector<1x8x1024xf32>,
    return
  }
  func.func @transform_0(%arg0: i32, %arg1: i32) -> (i32, i32) {
    %c1_i32 = arith.constant 1 : i32
    %0 = arith.muli %arg0, %c1_i32 : i32
    %1 = arith.addi %0, %arg1 : i32
    %c0_i32 = arith.constant 0 : i32
    %c0_i32_0 = arith.constant 0 : i32
    return %c0_i32, %1 : i32, i32
  }
  func.func @transform_1(%arg0: i32, %arg1: i32) -> (i32, i32) {
    %c1_i32 = arith.constant 1 : i32
    %0 = arith.muli %arg0, %c1_i32 : i32
    %1 = arith.addi %0, %arg1 : i32
    %c0_i32 = arith.constant 0 : i32
    %c0_i32_0 = arith.constant 0 : i32
    return %c0_i32, %1 : i32, i32
  }
  func.func @transform_2(%arg0: i32, %arg1: i32) -> (i32, i32, i32) {
    %c0_i32 = arith.constant 0 : i32
    %c0_i32_0 = arith.constant 0 : i32
    %c0_i32_1 = arith.constant 0 : i32
    return %arg0, %c0_i32, %c0_i32_0 : i32, i32, i32
  }
}

</mosaic_0001>

<bundles_post_ra>
// kernel: tpu_custom_call.1
= control target key start
LH: loop header
LB: loop body
LE: loop exit
PB: predicated region body
PF: predicated region fallthrough
CT: control target
= control target key end

     0   :  { %7 = vsyncpa [#allocation3], 0  ;;  %s3667_s0 = inlined_call_operand.hbm [shape: f32[20,1000], index: 0, kind: input, shape index: {}]   ;;  %s3668_s1 = inlined_call_operand.hbm [shape: f32[3,1000], index: 1, kind: input, shape index: {}]   ;;  %s3669_s2 = inlined_call_operand.hbm [shape: f32[1,8,1024], index: 2, kind: output, shape index: {}]  }
   0x1   :  { %8 = vsyncpa [#allocation6], 0 }
   0x2   :  { %9 = vsyncpa [#allocation4], 0  ;;  %s1754_s9 = smov [#allocation2]  }
   0x3   :  { %s19_s10 = sshll.u32 %s1754_s9, 4  ;;  %s20_s10 = int_to_ptr.vmem [resolvable:$true] %s19_s10 }
   0x4   :  { %s1696_s11 = scalar_lea.vmem %s20_s10, 3072  ;;  %p1701_p1 = scmp.lt.s32.totalorder %s20_s10, %s20_s10 }
   0x5   :  { %p1697_p0 = scmp.ne.s32.totalorder %s20_s10, %s1696_s11  ;;  %p1702_p2 = scmp.lt.s32.totalorder %s1696_s11, %s1696_s11 }
   0x7   :  { %p1703_p3 = por %p1702_p2, %p1701_p1 }
   0x9   :  { %p1704_p4 = pnand %p1703_p3, %p1697_p0 }
   0xb   :  { %1707 = shalt.err (!%p1704_p4)
}
   0xc   :  { %s1755_s12 = smov 1024   ;;  %s1756_s13 = smov 64  }
   0xd   :  { %25 = dma.hbm_to_vmem [thread:$0]  %s3667_s0, 3072, %s20_s10, [#allocation3], %s1755_s12, %s1755_s12, %s1756_s13  }
   0xe   :  { %s1757_s16 = smov [#allocation5]  }
   0xf   :  { %s36_s17 = sshll.u32 %s1757_s16, 4  ;;  %s37_s17 = int_to_ptr.vmem [resolvable:$true] %s36_s17 }
  0x10   :  { %s1716_s18 = scalar_lea.vmem %s37_s17, 512  ;;  %p1721_p6 = scmp.lt.s32.totalorder %s37_s17, %s37_s17 }
  0x11   :  { %p1717_p5 = scmp.ne.s32.totalorder %s37_s17, %s1716_s18  ;;  %p1722_p7 = scmp.lt.s32.totalorder %s1716_s18, %s1716_s18 }
  0x13   :  { %p1723_p8 = por %p1722_p7, %p1721_p6 }
  0x15   :  { %p1724_p9 = pnand %p1723_p8, %p1717_p5 }
  0x17   :  { %1727 = shalt.err (!%p1724_p9)
}
  0x18   :  { %39 = dma.hbm_to_vmem [thread:$0]  %s3668_s1, 512, %s37_s17, [#allocation6]  }
  0x19   :  { %1748 = dma.done.wait [#allocation3], 3072  }
  0x1a   :  { %1749 = vsyncadd [#allocation3], 4294964224 }
  0x1b   :  { %1750 = dma.done.wait [#allocation6], 512  }
  0x1c   :  { %1751 = vsyncadd [#allocation6], 4294966784  ;;  %v3670_v0 = vlaneseq  ;;  %v86_v2 = vld [vmem:[#allocation5] ss:$4 sm:$0xff]  ;;  %v3677_v61 = vmov 0.0   ;;  %s1759_s0 = smov [#allocation7]  }
  0x1d   :  { %v1782_v3 = vld [vmem:[#allocation2] sm:$0xff]  ;;  %v1784_v4 = vld [vmem:[#allocation2 + $0x8] sm:$0xff]  ;;  %v1786_v5 = vld [vmem:[#allocation2 + $0x10] sm:$0xff]  ;;  %v1536_v8 = vtrunc.f32 %v86_v2  ;;  %s1502_s1 = sshll.u32 %s1759_s0, 4  ;;  %s1503_s1 = int_to_ptr.vmem [resolvable:$true] %s1502_s1 }
  0x1e   :  { %v93_v1 = vshrl.u32 %v3670_v0, 7  ;;  %v203_v10 = vand.u32 2147483647, %v1782_v3  ;;  %v204_v11 = vand.u32 2147483647, %v1784_v4  ;;  %v1793_v13 = vld [vmem:[#allocation2 + $0x18] sm:$0xff]  ;;  %p1733_p11 = scmp.lt.s32.totalorder %s1503_s1, %s1503_s1 }
  0x1f   :  { %v205_v12 = vand.u32 2147483647, %v1786_v5  ;;  %v1803_v18 = vld [vmem:[#allocation2 + $0x20] sm:$0xff]  ;;  %v1805_v19 = vld [vmem:[#allocation2 + $0x28] sm:$0xff]  ;;  %v1807_v20 = vld [vmem:[#allocation2 + $0x30] sm:$0xff]  ;;  %v1537_v27 = vcvt.f32.s32 %v1536_v8  ;;  %s1728_s21 = scalar_lea.vmem %s1503_s1, 1024 }
  0x20   :  { %v94_v6 = vadd.s32 8, %v93_v1  ;;  %v95_v7 = vadd.s32 16, %v93_v1  ;;  %v1788_v9 = vadd.s32 1, %v93_v1  ;;  %v1795_v14 = vsub.s32 0, %v93_v1  ;;  %v1815_v24 = vld [vmem:[#allocation2 + $0x38] sm:$0xff]  ;;  %v1817_v25 = vld [vmem:[#allocation2 + $0x40] sm:$0xff]  ;;  %p1729_p10 = scmp.ne.s32.totalorder %s1503_s1, %s1728_s21  ;;  %p1734_p12 = scmp.lt.s32.totalorder %s1728_s21, %s1728_s21 }
  0x21   :  { %v1797_v15 = vsub.s32 1, %v93_v1  ;;  %v1799_v16 = vsub.s32 2, %v93_v1  ;;  %v1801_v17 = vsub.s32 3, %v93_v1  ;;  %v1813_v23 = vsub.s32 4, %v93_v1  ;;  %v1819_v26 = vld [vmem:[#allocation2 + $0x48] sm:$0xff]  ;;  %v1827_v31 = vld [vmem:[#allocation2 + $0x50] sm:$0xff] }
  0x22   :  { %3838 = vst [vmem:[#allocation11_spill] sm:$0xff] %v1795_v14  ;;  %v1809_v21 = vadd.s32 1, %v94_v6  ;;  %v1811_v22 = vadd.s32 1, %v95_v7  ;;  %v1821_v28 = vsub.s32 5, %v93_v1  ;;  %v1823_v29 = vsub.s32 6, %v93_v1  ;;  %v1829_v32 = vld [vmem:[#allocation2 + $0x58] sm:$0xff]  ;;  %p1735_p13 = por %p1734_p12, %p1733_p11 }
  0x23   :  { %3839 = vst [vmem:[#allocation12_spill] sm:$0xff] %v1797_v15  ;;  %3840 = vst [vmem:[#allocation13_spill] sm:$0xff] %v1799_v16  ;;  %v1825_v30 = vsub.s32 7, %v93_v1  ;;  %v1831_v33 = vld [vmem:[#allocation2 + $0x60] sm:$0xff]  ;;  %v206_v34 = vand.u32 2147483647, %v1793_v13  ;;  %v102_v47 = vrot.slane %v1537_v27, %v1795_v14  ;;  %v106_v48 = vrot.slane %v1537_v27, %v1797_v15 }
  0x24   :  { %3841 = vst [vmem:[#allocation14_spill] sm:$0xff] %v1801_v17  ;;  %3842 = vst [vmem:[#allocation15_spill] sm:$0xff] %v1813_v23  ;;  %v1834_v35 = vsub.f32 0.0, %v203_v10  ;;  %v1836_v36 = vsub.f32 0.0, %v204_v11  ;;  %v1838_v37 = vsub.f32 0.0, %v205_v12  ;;  %v1846_v44 = vld [vmem:[#allocation2 + $0x68] sm:$0xff]  ;;  %v1855_v49 = vrot.slane %v1537_v27, %v1799_v16  ;;  %p1736_p0 = pnand %p1735_p13, %p1729_p10 }
  0x25   :  { %3843 = vst [vmem:[#allocation16_spill] sm:$0xff] %v1821_v28  ;;  %3844 = vst [vmem:[#allocation17_spill] sm:$0xff] %v1823_v29  ;;  %v207_v38 = vand.u32 2147483647, %v1803_v18  ;;  %v208_v39 = vand.u32 2147483647, %v1805_v19  ;;  %v1858_v50 = vrot.slane %v1537_v27, %v1801_v17  ;;  %v1861_v51 = vrot.slane %v1537_v27, %v1813_v23 }
  0x26   :  { %3845 = vst [vmem:[#allocation18_spill] sm:$0xff] %v1825_v30  ;;  %v209_v40 = vand.u32 2147483647, %v1807_v20  ;;  %v210_v41 = vand.u32 2147483647, %v1815_v24  ;;  %v1848_v45 = vld [vmem:[#allocation2 + $0x70] sm:$0xff]  ;;  %v1864_v52 = vrot.slane %v1537_v27, %v1821_v28  ;;  %v1867_v53 = vrot.slane %v1537_v27, %v1823_v29 }
  0x27   :  { %v1850_v46 = vld [vmem:[#allocation2 + $0x78] sm:$0xff]  ;;  %v1870_v54 = vrot.slane %v1537_v27, %v1825_v30  ;;  %vm131_vm0 = vcmp.eq.s32.totalorder %v102_v47, %v1788_v9  ;;  %vm132_vm1 = vcmp.eq.s32.totalorder %v106_v48, %v1788_v9  ;;  %vm133_vm2 = vcmp.eq.s32.totalorder %v1855_v49, %v1788_v9  ;;  %v2013_v43 = vld [vmem:[#allocation2 + $0x88] sm:$0xf]  ;;  %v2025_v29 = vld [vmem:[#allocation2 + $0x90] sm:$0xf] }
  0x28   :  { %vm134_vm3 = vcmp.eq.s32.totalorder %v1858_v50, %v1788_v9  ;;  %vm135_vm4 = vcmp.eq.s32.totalorder %v1861_v51, %v1788_v9  ;;  %vm136_vm5 = vcmp.eq.s32.totalorder %v1864_v52, %v1788_v9  ;;  %vm137_vm6 = vcmp.eq.s32.totalorder %v1867_v53, %v1788_v9  ;;  %v2053_v15 = vld [vmem:[#allocation2 + $0xa8] sm:$0xf] }
  0x29   :  { %vm138_vm7 = vcmp.eq.s32.totalorder %v1870_v54, %v1788_v9  ;;  %vm143_vm12 = vcmp.eq.s32.totalorder %v1861_v51, %v1809_v21  ;;  %vm144_vm13 = vcmp.eq.s32.totalorder %v1864_v52, %v1809_v21  ;;  %vm145_vm14 = vcmp.eq.s32.totalorder %v1867_v53, %v1809_v21 }
  0x2a   :  { %vm146_vm15 = vcmp.eq.s32.totalorder %v1870_v54, %v1809_v21  ;;  %vm147_vm9 = vcmp.eq.s32.totalorder %v102_v47, %v1811_v22  ;;  %vm148_vm8 = vcmp.eq.s32.totalorder %v106_v48, %v1811_v22  ;;  %vm149_vm10 = vcmp.eq.s32.totalorder %v1855_v49, %v1811_v22 }
  0x2b   :  { %vm150_vm11 = vcmp.eq.s32.totalorder %v1858_v50, %v1811_v22  ;;  %v1915_v62 = vsel %vm131_vm0, 1.0, %v3677_v61  ;;  %v1920_v63 = vsel %vm132_vm1, 1.0, %v3677_v61  ;;  %v1926_v1 = vsel %vm133_vm2, 1.0, %v3677_v61 }
  0x2c   :  { %3846 = vst [vmem:[#allocation19_spill] sm:$0xff] %v1915_v62  ;;  %3847 = vst [vmem:[#allocation20_spill] sm:$0xff] %v1920_v63  ;;  %v1932_v2 = vsel %vm134_vm3, 1.0, %v3677_v61  ;;  %v1938_v6 = vsel %vm135_vm4, 1.0, %v3677_v61  ;;  %v1944_v7 = vsel %vm136_vm5, 1.0, %v3677_v61  ;;  %v1950_v8 = vsel %vm137_vm6, 1.0, %v3677_v61 }
  0x2d   :  { %3848 = vst [vmem:[#allocation21_spill] sm:$0xff] %v1926_v1  ;;  %3849 = vst [vmem:[#allocation22_spill] sm:$0xff] %v1932_v2  ;;  %v1956_v10 = vsel %vm138_vm7, 1.0, %v3677_v61  ;;  %vm3854_vm0 = vcmp.eq.s32.totalorder %v102_v47, %v1809_v21  ;;  %vm3856_vm1 = vcmp.eq.s32.totalorder %v106_v48, %v1809_v21  ;;  %vm3858_vm2 = vcmp.eq.s32.totalorder %v1855_v49, %v1809_v21 }
  0x2e   :  { %3850 = vst [vmem:[#allocation23_spill] sm:$0xff] %v1938_v6  ;;  %3851 = vst [vmem:[#allocation24_spill] sm:$0xff] %v1944_v7  ;;  %v1961_v11 = vsel %vm3854_vm0, 1.0, %v3677_v61  ;;  %v1966_v12 = vsel %vm3856_vm1, 1.0, %v3677_v61  ;;  %v1972_v27 = vsel %vm3858_vm2, 1.0, %v3677_v61  ;;  %v230_v0 = vsub.f32 0.0, %v206_v34 }
  0x2f   :  { %3852 = vst [vmem:[#allocation25_spill] sm:$0xff] %v1950_v8  ;;  %3853 = vst [vmem:[#allocation26_spill] sm:$0xff] %v1956_v10  ;;  %vm3860_vm3 = vcmp.eq.s32.totalorder %v1858_v50, %v1809_v21  ;;  %v1984_v60 = vsel %vm143_vm12, 1.0, %v3677_v61  ;;  %v1990_v59 = vsel %vm144_vm13, 1.0, %v3677_v61  ;;  %v231_v58 = vsub.f32 0.0, %v207_v38 }
  0x30   :  { %3855 = vst [vmem:[#allocation27_spill] sm:$0xff] %v1961_v11  ;;  %3857 = vst [vmem:[#allocation28_spill] sm:$0xff] %v1966_v12  ;;  %v1978_v9 = vsel %vm3860_vm3, 1.0, %v3677_v61  ;;  %v1992_v34 = vld [vmem:[#allocation2 + $0x80] sm:$0xf]  ;;  %v1998_v57 = vsel %vm145_vm14, 1.0, %v3677_v61  ;;  %vm151_vm4 = vcmp.eq.s32.totalorder %v1861_v51, %v1811_v22  ;;  %vm152_vm5 = vcmp.eq.s32.totalorder %v1864_v52, %v1811_v22 }
  0x31   :  { %3859 = vst [vmem:[#allocation29_spill] sm:$0xff] %v1972_v27  ;;  %3861 = vst [vmem:[#allocation30_spill] sm:$0xff] %v1978_v9  ;;  %v2004_v56 = vsel %vm146_vm15, 1.0, %v3677_v61  ;;  %v2009_v55 = vsel %vm147_vm9, 1.0, %v3677_v61  ;;  %v232_v38 = vsub.f32 0.0, %v208_v39  ;;  %v2018_v42 = vsel %vm148_vm8, 1.0, %v3677_v61 }
  0x32   :  { %3862 = vst [vmem:[#allocation31_spill] sm:$0xff] %v1984_v60  ;;  %3863 = vst [vmem:[#allocation32_spill] sm:$0xff] %v1990_v59  ;;  %v233_v21 = vsub.f32 0.0, %v209_v40  ;;  %v234_v30 = vsub.f32 0.0, %v210_v41  ;;  %v251_v47 = vmul.f32 1.442695, %v1834_v35  ;;  %vm153_vm6 = vcmp.eq.s32.totalorder %v1867_v53, %v1811_v22 }
  0x33   :  { %3864 = vst [vmem:[#allocation33_spill] sm:$0xff] %v1998_v57  ;;  %3865 = vst [vmem:[#allocation34_spill] sm:$0xff] %v2004_v56  ;;  %v253_v39 = vmul.f32 1.442695, %v1836_v36  ;;  %v255_v28 = vmul.f32 1.442695, %v1838_v37  ;;  %vm154_vm7 = vcmp.eq.s32.totalorder %v1870_v54, %v1811_v22  ;;  %v2119_v53 = vmul.f32 %v1920_v63, %v1784_v4 }
  0x34   :  { %3866 = vst [vmem:[#allocation35_spill] sm:$0xff] %v2009_v55  ;;  %3867 = vst [vmem:[#allocation36_spill] sm:$0xff] %v2018_v42  ;;  %v257_v48 = vmul.f32 1.442695, %v230_v0  ;;  %v2031_v61 = vld [vmem:[#allocation2 + $0x98] sm:$0xf]  ;;  %1544 = vpow2.f32 %v251_v47 }
  0x35   :  { %v3868_v40 = vmov 0.0   ;;  %v3870_v41 = vand.u32 2147483647, %v1817_v25  ;;  %v259_v17 = vmul.f32 1.442695, %v231_v58  ;;  %1546 = vpow2.f32 %v253_v39 }
  0x36   :  { %v2039_v35 = vsel %vm149_vm10, 1.0, %v3868_v40  ;;  %v2043_v36 = vld [vmem:[#allocation2 + $0xa0] sm:$0xf]  ;;  %v2049_v0 = vsel %vm150_vm11, 1.0, %v3868_v40  ;;  %v3872_v37 = vand.u32 2147483647, %v1819_v26  ;;  %1548 = vpow2.f32 %v255_v28 }
  0x37   :  { %3869 = vst [vmem:[#allocation37_spill] sm:$0xff] %v2039_v35  ;;  %v235_v23 = vsub.f32 0.0, %v3870_v41  ;;  %3871 = vst [vmem:[#allocation38_spill] sm:$0xff] %v2049_v0  ;;  %v261_v49 = vmul.f32 1.442695, %v232_v38  ;;  %1550 = vpow2.f32 %v257_v48  ;;  %v2103_v52 = vsel %vm153_vm6, 1.0, %v3868_v40 }
  0x38   :  { %v236_v16 = vsub.f32 0.0, %v3872_v37  ;;  %v219_v14 = vand.u32 2147483647, %v1992_v34  ;;  %v3873_v47 = vand.u32 2147483647, %v1827_v31  ;;  %1552 = vpow2.f32 %v259_v17  ;;  %3881 = vst [vmem:[#allocation41_spill] sm:$0xff] %v2103_v52 }
  0x39   :  { %v263_v41 = vmul.f32 1.442695, %v233_v21  ;;  %v2058_v35 = vld [vmem:[#allocation2 + $0xb0] sm:$0xf]  ;;  %v220_v50 = vand.u32 2147483647, %v2013_v43  ;;  %1554 = vpow2.f32 %v261_v49 }
  0x3a   :  { %v237_v58 = vsub.f32 0.0, %v3873_v47  ;;  %v3874_v38 = vand.u32 2147483647, %v1829_v32  ;;  %v265_v37 = vmul.f32 1.442695, %v234_v30  ;;  %v243_v12 = vsub.f32 0.0, %v219_v14 }
  0x3b   :  { %v2067_v0 = vld [vmem:[#allocation2 + $0xb8] sm:$0xf]  ;;  %v221_v28 = vand.u32 2147483647, %v2025_v29  ;;  %v3875_v21 = vand.u32 2147483647, %v1831_v33  ;;  %1556 = vpow2.f32 %v263_v41 }
  0x3c   :  { %v238_v39 = vsub.f32 0.0, %v3874_v38  ;;  %v267_v42 = vmul.f32 1.442695, %v235_v23  ;;  %v222_v55 = vand.u32 2147483647, %v2031_v61  ;;  %1558 = vpow2.f32 %v265_v37 }
  0x3d   :  { %v239_v47 = vsub.f32 0.0, %v3875_v21  ;;  %v3876_v56 = vand.u32 2147483647, %v1846_v44  ;;  %v269_v59 = vmul.f32 1.442695, %v236_v16  ;;  %v244_v49 = vsub.f32 0.0, %v220_v50 }
  0x3e   :  { %v223_v38 = vand.u32 2147483647, %v2043_v36  ;;  %v3877_v30 = vand.u32 2147483647, %v1848_v45  ;;  %v271_v60 = vmul.f32 1.442695, %v237_v58  ;;  %1560 = vpow2.f32 %v267_v42 }
  0x3f   :  { %v240_v57 = vsub.f32 0.0, %v3876_v56  ;;  %v224_v9 = vand.u32 2147483647, %v2053_v15  ;;  %v3878_v21 = vand.u32 2147483647, %v1850_v46  ;;  %1562 = vpow2.f32 %v269_v59 }
  0x40   :  { %v241_v48 = vsub.f32 0.0, %v3877_v30  ;;  %v273_v23 = vmul.f32 1.442695, %v238_v39  ;;  %v225_v27 = vand.u32 2147483647, %v2058_v35  ;;  %v2087_v58 = vsel %vm151_vm4, 1.0, %v3868_v40 }
  0x41   :  { %v242_v17 = vsub.f32 0.0, %v3878_v21  ;;  %v275_v56 = vmul.f32 1.442695, %v239_v47  ;;  %v226_v16 = vand.u32 2147483647, %v2067_v0  ;;  %3879 = vst [vmem:[#allocation39_spill] sm:$0xff] %v2087_v58  ;;  %1564 = vpow2.f32 %v271_v60  ;;  %v2095_v47 = vpop.eup %1544 }
  0x42   :  { %v277_v11 = vmul.f32 1.442695, %v240_v57  ;;  %v245_v41 = vsub.f32 0.0, %v221_v28  ;;  %v279_v37 = vmul.f32 1.442695, %v241_v48  ;;  %v2093_v14 = vsel %vm152_vm5, 1.0, %v3868_v40  ;;  %v2097_v28 = vpop.eup %1546 }
  0x43   :  { %3880 = vst [vmem:[#allocation40_spill] sm:$0xff] %v2093_v14  ;;  %v246_v42 = vsub.f32 0.0, %v222_v55  ;;  %1566 = vpow2.f32 %v273_v23  ;;  %v281_v50 = vmul.f32 1.442695, %v242_v17  ;;  %v247_v59 = vsub.f32 0.0, %v223_v38 }
  0x44   :  { %v248_v57 = vsub.f32 0.0, %v224_v9  ;;  %1568 = vpow2.f32 %v275_v56  ;;  %v283_v39 = vmul.f32 1.442695, %v243_v12  ;;  %v249_v51 = vsub.f32 0.0, %v225_v27  ;;  %v2111_v27 = vpop.eup %1548 }
  0x45   :  { %v250_v30 = vsub.f32 0.0, %v226_v16  ;;  %1570 = vpow2.f32 %v277_v11  ;;  %v285_v60 = vmul.f32 1.442695, %v244_v49  ;;  %v2109_v55 = vsel %vm154_vm7, 1.0, %v3868_v40  ;;  %v2121_v38 = vpop.eup %1550 }
  0x46   :  { %3882 = vst [vmem:[#allocation42_spill] sm:$0xff] %v2109_v55  ;;  %1572 = vpow2.f32 %v279_v37  ;;  %v287_v12 = vmul.f32 1.442695, %v245_v41  ;;  %v289_v11 = vmul.f32 1.442695, %v246_v42  ;;  %v2115_v9 = vmul.f32 %v1915_v62, %v1782_v3  ;;  %v2127_v48 = vpop.eup %1552 }
  0x47   :  { %1574 = vpow2.f32 %v281_v50  ;;  %v291_v22 = vmul.f32 1.442695, %v247_v59  ;;  %v293_v54 = vmul.f32 1.442695, %v248_v57  ;;  %v2125_v40 = vmul.f32 %v1926_v1, %v1786_v5  ;;  %v2132_v56 = vpop.eup %1554 }
  0x48   :  { %1576 = vpow2.f32 %v283_v39  ;;  %v295_v21 = vmul.f32 1.442695, %v249_v51  ;;  %v297_v17 = vmul.f32 1.442695, %v250_v30  ;;  %v2130_v23 = vadd.f32 1.0, %v2095_v47  ;;  %v2139_v37 = vpop.eup %1556 }
  0x49   :  { %1578 = vpow2.f32 %v285_v60  ;;  %v2135_v16 = vadd.f32 1.0, %v2097_v28  ;;  %v2142_v42 = vadd.f32 1.0, %v2111_v27  ;;  %v2146_v57 = vpop.eup %1558  ;;  %v2149_v39 = vadd.f32 1.0, %v2121_v38 }
  0x4a   :  { %3883 = vst [vmem:[#allocation43_spill] sm:$0xff] %v2130_v23  ;;  %1580 = vpow2.f32 %v287_v12  ;;  %3886 = vst [vmem:[#allocation46_spill] sm:$0xff] %v2146_v57  ;;  %v2156_v12 = vadd.f32 1.0, %v2127_v48  ;;  %v2230_v30 = vmul.f32 %v1932_v2, %v1793_v13  ;;  %v2234_v51 = vmul.f32 %v1938_v6, %v1803_v18 }
  0x4b   :  { %3884 = vst [vmem:[#allocation44_spill] sm:$0xff] %v2135_v16  ;;  %1582 = vpow2.f32 %v289_v11  ;;  %3885 = vst [vmem:[#allocation45_spill] sm:$0xff] %v2142_v42  ;;  %v2153_v60 = vpop.eup %1560  ;;  %v2244_v11 = vmul.f32 %v1944_v7, %v1805_v19  ;;  %vm347_vm8 = vcmp.ge.f32.partialorder %v1782_v3, 0.0  ;;  %vm348_vm9 = vcmp.ge.f32.partialorder %v1784_v4, 0.0 }
  0x4c   :  { %1584 = vpow2.f32 %v291_v22  ;;  %3887 = vst [vmem:[#allocation47_spill] sm:$0xff] %v2149_v39  ;;  %3888 = vst [vmem:[#allocation48_spill] sm:$0xff] %v2153_v60  ;;  %v2160_v50 = vpop.eup %1562  ;;  %v2163_v22 = vadd.f32 1.0, %v2132_v56  ;;  %vm349_vm10 = vcmp.ge.f32.partialorder %v1786_v5, 0.0  ;;  %vm350_vm11 = vcmp.ge.f32.partialorder %v1793_v13, 0.0 }
  0x4d   :  { %1586 = vpow2.f32 %v293_v54  ;;  %3889 = vst [vmem:[#allocation49_spill] sm:$0xff] %v2156_v12  ;;  %3890 = vst [vmem:[#allocation50_spill] sm:$0xff] %v2160_v50  ;;  %v2170_v54 = vadd.f32 1.0, %v2139_v37  ;;  %v2193_v62 = vadd.f32 1.0, %v2160_v50  ;;  %vm351_vm12 = vcmp.ge.f32.partialorder %v1803_v18, 0.0 }
  0x4e   :  { %1588 = vpow2.f32 %v295_v21  ;;  %3891 = vst [vmem:[#allocation51_spill] sm:$0xff] %v2163_v22  ;;  %v2167_v41 = vpop.eup %1564  ;;  %v2177_v21 = vadd.f32 1.0, %v2146_v57  ;;  %vm352_vm13 = vcmp.ge.f32.partialorder %v1805_v19, 0.0  ;;  %vm353_vm14 = vcmp.ge.f32.partialorder %v1807_v20, 0.0 }
  0x4f   :  { %3892 = vst [vmem:[#allocation52_spill] sm:$0xff] %v2167_v41  ;;  %1590 = vpow2.f32 %v297_v17  ;;  %3893 = vst [vmem:[#allocation53_spill] sm:$0xff] %v2170_v54  ;;  %v2185_v17 = vadd.f32 1.0, %v2153_v60  ;;  %v2201_v60 = vadd.f32 1.0, %v2167_v41  ;;  %vm354_vm15 = vcmp.ge.f32.partialorder %v1815_v24, 0.0 }
  0x50   :  { %v2174_v49 = vpop.eup %1566  ;;  %3895 = vst [vmem:[#allocation55_spill] sm:$0xff] %v2177_v21  ;;  %1592 = vrcp.f32 %v2130_v23  ;;  %3899 = vst [vmem:[#allocation59_spill] sm:$0xff] %v2193_v62  ;;  %vm355_vm0 = vcmp.ge.f32.partialorder %v1817_v25, 0.0  ;;  %vm356_vm1 = vcmp.ge.f32.partialorder %v1819_v26, 0.0  ;;  %vm357_vm2 = vcmp.ge.f32.partialorder %v1827_v31, 0.0 }
  0x51   :  { %3894 = vst [vmem:[#allocation54_spill] sm:$0xff] %v2174_v49  ;;  %v2182_v1 = vpop.eup %1568  ;;  %3897 = vst [vmem:[#allocation57_spill] sm:$0xff] %v2185_v17  ;;  %1594 = vrcp.f32 %v2135_v16  ;;  %v2209_v50 = vadd.f32 1.0, %v2174_v49  ;;  %vm358_vm3 = vcmp.ge.f32.partialorder %v1829_v32, 0.0  ;;  %vm359_vm4 = vcmp.ge.f32.partialorder %v1831_v33, 0.0 }
  0x52   :  { %3896 = vst [vmem:[#allocation56_spill] sm:$0xff] %v2182_v1  ;;  %v2190_v63 = vpop.eup %1570  ;;  %1596 = vrcp.f32 %v2142_v42  ;;  %3901 = vst [vmem:[#allocation61_spill] sm:$0xff] %v2201_v60  ;;  %v2217_v41 = vadd.f32 1.0, %v2182_v1  ;;  %vm360_vm5 = vcmp.ge.f32.partialorder %v1846_v44, 0.0  ;;  %vm361_vm6 = vcmp.ge.f32.partialorder %v1848_v45, 0.0 }
  0x53   :  { %3898 = vst [vmem:[#allocation58_spill] sm:$0xff] %v2190_v63  ;;  %v2198_v23 = vpop.eup %1572  ;;  %1598 = vrcp.f32 %v2149_v39  ;;  %3903 = vst [vmem:[#allocation63_spill] sm:$0xff] %v2209_v50  ;;  %v2225_v49 = vadd.f32 1.0, %v2190_v63  ;;  %vm362_vm7 = vcmp.ge.f32.partialorder %v1850_v46, 0.0 }
  0x54   :  { %3900 = vst [vmem:[#allocation60_spill] sm:$0xff] %v2198_v23  ;;  %v2206_v16 = vpop.eup %1574  ;;  %1600 = vrcp.f32 %v2156_v12  ;;  %3905 = vst [vmem:[#allocation65_spill] sm:$0xff] %v2217_v41  ;;  %v2239_v59 = vadd.f32 1.0, %v2198_v23  ;;  %v2258_v12 = vmul.f32 %v1956_v10, %v1815_v24  ;;  %v3918_v10 = vld [vmem:[#allocation29_spill] sm:$0xff] }
  0x55   :  { %3902 = vst [vmem:[#allocation62_spill] sm:$0xff] %v2206_v16  ;;  %v2214_v42 = vpop.eup %1576  ;;  %1602 = vrcp.f32 %v2163_v22  ;;  %3907 = vst [vmem:[#allocation67_spill] sm:$0xff] %v2225_v49  ;;  %v2253_v6 = vadd.f32 1.0, %v2206_v16  ;;  %v3916_v16 = vld [vmem:[#allocation28_spill] sm:$0xff]  ;;  %v2277_v63 = vmul.f32 %v3918_v10, %v1827_v31 }
  0x56   :  { %3904 = vst [vmem:[#allocation64_spill] sm:$0xff] %v2214_v42  ;;  %v2222_v39 = vpop.eup %1578  ;;  %1604 = vrcp.f32 %v2170_v54  ;;  %3909 = vst [vmem:[#allocation69_spill] sm:$0xff] %v2239_v59  ;;  %v2248_v54 = vmul.f32 %v1950_v8, %v1807_v20  ;;  %v2267_v8 = vadd.f32 1.0, %v2214_v42 }
  0x57   :  { %3906 = vst [vmem:[#allocation66_spill] sm:$0xff] %v2222_v39  ;;  %v2236_v22 = vpop.eup %1580  ;;  %1606 = vrcp.f32 %v2177_v21  ;;  %3911 = vst [vmem:[#allocation71_spill] sm:$0xff] %v2253_v6  ;;  %v3912_v21 = vld [vmem:[#allocation27_spill] sm:$0xff] }
  0x58   :  { %3908 = vst [vmem:[#allocation68_spill] sm:$0xff] %v2236_v22  ;;  %v2250_v2 = vpop.eup %1582  ;;  %1608 = vrcp.f32 %v2185_v17  ;;  %v2262_v23 = vmul.f32 %v3912_v21, %v1817_v25  ;;  %3915 = vst [vmem:[#allocation74_spill] sm:$0xff] %v2267_v8  ;;  %v2273_v17 = vmul.f32 %v3916_v16, %v1819_v26  ;;  %v2282_v21 = vadd.f32 1.0, %v2222_v39  ;;  %v3923_v16 = vld [vmem:[#allocation31_spill] sm:$0xff]  ;;  %v3927_v39 = vld [vmem:[#allocation32_spill] sm:$0xff] }
  0x59   :  { %3910 = vst [vmem:[#allocation70_spill] sm:$0xff] %v2250_v2  ;;  %v2264_v7 = vpop.eup %1584  ;;  %1610 = vrcp.f32 %v2193_v62  ;;  %3919 = vst [vmem:[#allocation76_spill] sm:$0xff] %v2277_v63  ;;  %v3922_v62 = vld [vmem:[#allocation30_spill] sm:$0xff]  ;;  %v2297_v10 = vadd.f32 1.0, %v2236_v22  ;;  %v3929_v63 = vld [vmem:[#allocation33_spill] sm:$0xff] }
  0x5a   :  { %3913 = vst [vmem:[#allocation72_spill] sm:$0xff] %v2262_v23  ;;  %3914 = vst [vmem:[#allocation73_spill] sm:$0xff] %v2264_v7  ;;  %v2279_v1 = vpop.eup %1586  ;;  %1612 = vrcp.f32 %v2201_v60  ;;  %v2288_v42 = vmul.f32 %v3922_v62, %v1829_v32  ;;  %v2302_v60 = vmul.f32 %v3927_v39, %v1846_v44  ;;  %v2306_v57 = vmul.f32 %v3929_v63, %v1848_v45  ;;  %v3931_v22 = vld [vmem:[#allocation34_spill] sm:$0xff]  ;;  %v3933_v39 = vld [vmem:[#allocation35_spill] sm:$0xff] }
  0x5b   :  { %3917 = vst [vmem:[#allocation75_spill] sm:$0xff] %v2273_v17  ;;  %3920 = vst [vmem:[#allocation77_spill] sm:$0xff] %v2279_v1  ;;  %v2292_v17 = vmul.f32 %v3923_v16, %v1831_v33  ;;  %v2294_v23 = vpop.eup %1588  ;;  %1614 = vrcp.f32 %v2209_v50  ;;  %v2311_v16 = vadd.f32 1.0, %v2250_v2  ;;  %v2317_v50 = vmul.f32 %v3931_v22, %v1850_v46  ;;  %v3937_v22 = vld [vmem:[#allocation37_spill] sm:$0xff] }
  0x5c   :  { %3921 = vst [vmem:[#allocation78_spill] sm:$0xff] %v2282_v21  ;;  %3925 = vst [vmem:[#allocation80_spill] sm:$0xff] %v2294_v23  ;;  %v2308_v62 = vpop.eup %1590  ;;  %1616 = vrcp.f32 %v2217_v41  ;;  %v2324_v63 = vadd.f32 1.0, %v2264_v7  ;;  %v3935_v41 = vld [vmem:[#allocation36_spill] sm:$0xff] }
  0x5d   :  { %3924 = vst [vmem:[#allocation79_spill] sm:$0xff] %v2292_v17  ;;  %3926 = vst [vmem:[#allocation81_spill] sm:$0xff] %v2297_v10  ;;  %v1593_v17 = vpop.eup %1592  ;;  %1618 = vrcp.f32 %v2225_v49  ;;  %v2331_v2 = vmul.f32 %v3935_v41, %v2013_v43  ;;  %v3938_v49 = vld [vmem:[#allocation38_spill] sm:$0xff]  ;;  %v2348_v41 = vmul.f32 %v2087_v58, %v2043_v36 }
  0x5e   :  { %3928 = vst [vmem:[#allocation82_spill] sm:$0xff] %v2302_v60  ;;  %3930 = vst [vmem:[#allocation83_spill] sm:$0xff] %v2308_v62  ;;  %v2321_v60 = vmul.f32 %v3933_v39, %v1992_v34  ;;  %v1595_v39 = vpop.eup %1594  ;;  %1620 = vrcp.f32 %v2239_v59  ;;  %v2344_v7 = vmul.f32 %v3938_v49, %v2031_v61  ;;  %v2358_v59 = vmul.f32 %v2093_v14, %v2053_v15 }
  0x5f   :  { %3932 = vst [vmem:[#allocation84_spill] sm:$0xff] %v2317_v50  ;;  %3936 = vst [vmem:[#allocation86_spill] sm:$0xff] %v2331_v2  ;;  %v2335_v50 = vmul.f32 %v3937_v22, %v2025_v29  ;;  %v1597_v2 = vpop.eup %1596  ;;  %v2351_v22 = vadd.f32 1.0, %v2294_v23  ;;  %1622 = vrcp.f32 %v2253_v6  ;;  %v2362_v49 = vmul.f32 %v2103_v52, %v2058_v35 }
  0x60   :  { %3934 = vst [vmem:[#allocation85_spill] sm:$0xff] %v2321_v60  ;;  %v2338_v60 = vadd.f32 1.0, %v2279_v1  ;;  %3940 = vst [vmem:[#allocation88_spill] sm:$0xff] %v2358_v59  ;;  %v1599_v58 = vpop.eup %1598  ;;  %1624 = vrcp.f32 %v2267_v8  ;;  %v371_v23 = vmul.f32 %v1593_v17, %v2095_v47  ;;  %v2369_v6 = vmul.f32 %v2109_v55, %v2067_v0 }
  0x61   :  { %3939 = vst [vmem:[#allocation87_spill] sm:$0xff] %v2351_v22  ;;  %3941 = vst [vmem:[#allocation89_spill] sm:$0xff] %v2362_v49  ;;  %v3943_v1 = vmax.f32 %v1782_v3, 0.0  ;;  %v1601_v59 = vpop.eup %1600  ;;  %v2377_v52 = vadd.f32 1.0, %v2308_v62  ;;  %1626 = vrcp.f32 %v2282_v21  ;;  %v372_v8 = vmul.f32 %v1595_v39, %v2097_v28 }
  0x62   :  { %3942 = vst [vmem:[#allocation90_spill] sm:$0xff] %v2369_v6  ;;  %v3946_v49 = vmax.f32 %v1784_v4, 0.0  ;;  %v1603_v6 = vpop.eup %1602  ;;  %1628 = vrcp.f32 %v2297_v10  ;;  %v3952_v62 = vmax.f32 %v1803_v18, 0.0  ;;  %v3954_v10 = vmax.f32 %v1805_v19, 0.0 }
  0x63   :  { %v2374_v14 = vsub.f32 %v3943_v1, %v2115_v9  ;;  %3945 = vst [vmem:[#allocation92_spill] sm:$0xff] %v2377_v52  ;;  %v3948_v1 = vmax.f32 %v1786_v5, 0.0  ;;  %1630 = vrcp.f32 %v2311_v16 }
  0x64   :  { %v2385_v55 = vsub.f32 %v3946_v49, %v2119_v53  ;;  %v2402_v53 = vsub.f32 %v3952_v62, %v2234_v51  ;;  %v1605_v49 = vpop.eup %1604  ;;  %1632 = vrcp.f32 %v2324_v63  ;;  %v374_v62 = vmul.f32 %v1599_v58, %v2121_v38 }
  0x65   :  { %3944 = vst [vmem:[#allocation91_spill] sm:$0xff] %v2374_v14  ;;  %v2392_v9 = vsub.f32 %v3948_v1, %v2125_v40  ;;  %v3950_v14 = vmax.f32 %v1793_v13, 0.0  ;;  %v2409_v40 = vsub.f32 %v3954_v10, %v2244_v11  ;;  %v3956_v1 = vmax.f32 %v1807_v20, 0.0 }
  0x66   :  { %3947 = vst [vmem:[#allocation93_spill] sm:$0xff] %v2385_v55  ;;  %3953 = vst [vmem:[#allocation96_spill] sm:$0xff] %v2402_v53  ;;  %v373_v55 = vmul.f32 %v1597_v2, %v2111_v27  ;;  %v375_v51 = vmul.f32 %v1601_v59, %v2127_v48  ;;  %v2422_v53 = vsel %vm347_vm8, %v1593_v17, %v371_v23  ;;  %1634 = vrcp.f32 %v2338_v60  ;;  %v3962_v23 = vld [vmem:[#allocation46_spill] sm:$0xff] }
  0x67   :  { %3949 = vst [vmem:[#allocation94_spill] sm:$0xff] %v2392_v9  ;;  %v2397_v21 = vsub.f32 %v3950_v14, %v2230_v30  ;;  %3955 = vst [vmem:[#allocation97_spill] sm:$0xff] %v2409_v40  ;;  %v2414_v14 = vsub.f32 %v3956_v1, %v2248_v54  ;;  %v1607_v30 = vpop.eup %1606  ;;  %v376_v11 = vmul.f32 %v1603_v6, %v2132_v56  ;;  %v3960_v1 = vmax.f32 %v1815_v24, 0.0  ;;  %v3993_v24 = vld [vmem:[#allocation84_spill] sm:$0xff] }
  0x68   :  { %3958 = vst [vmem:[#allocation99_spill] sm:$0xff] %v2422_v53  ;;  %v1609_v10 = vpop.eup %1608  ;;  %v2428_v54 = vsel %vm348_vm9, %v1595_v39, %v372_v8  ;;  %1636 = vrcp.f32 %v2351_v22  ;;  %v377_v3 = vmul.f32 %v1605_v49, %v2139_v37  ;;  %v378_v17 = vmul.f32 %v1607_v30, %v3962_v23  ;;  %v3963_v53 = vld [vmem:[#allocation72_spill] sm:$0xff] }
  0x69   :  { %3951 = vst [vmem:[#allocation95_spill] sm:$0xff] %v2397_v21  ;;  %3957 = vst [vmem:[#allocation98_spill] sm:$0xff] %v2414_v14  ;;  %v2433_v14 = vsub.f32 %v3960_v1, %v2258_v12  ;;  %v1611_v40 = vpop.eup %1610  ;;  %v3964_v21 = vmax.f32 %v1817_v25, 0.0  ;;  %1638 = vrcp.f32 %v2377_v52  ;;  %v3966_v39 = vld [vmem:[#allocation48_spill] sm:$0xff]  ;;  %v2449_v1 = vsel %vm349_vm10, %v1597_v2, %v373_v55  ;;  %v4000_v25 = vld [vmem:[#allocation86_spill] sm:$0xff] }
  0x6a   :  { %3959 = vst [vmem:[#allocation100_spill] sm:$0xff] %v2428_v54  ;;  %v1613_v8 = vpop.eup %1612  ;;  %v379_v12 = vmul.f32 %v1609_v10, %v3966_v39  ;;  %3967 = vst [vmem:[#allocation72_spill] sm:$0xff] %v2449_v1  ;;  %v3968_v54 = vld [vmem:[#allocation75_spill] sm:$0xff]  ;;  %vm363_vm8 = vcmp.ge.f32.partialorder %v1992_v34, 0.0  ;;  %v2466_v5 = vsel %vm351_vm12, %v1601_v59, %v375_v51  ;;  %v3974_v2 = vld [vmem:[#allocation76_spill] sm:$0xff]  ;;  %v3975_v55 = vmax.f32 %v1827_v31, 0.0 }
  0x6b   :  { %3961 = vst [vmem:[#allocation101_spill] sm:$0xff] %v2433_v14  ;;  %v2442_v4 = vsub.f32 %v3964_v21, %v3963_v53  ;;  %v3969_v14 = vmax.f32 %v1819_v26, 0.0  ;;  %v1615_v22 = vpop.eup %1614  ;;  %v3971_v21 = vld [vmem:[#allocation50_spill] sm:$0xff]  ;;  %vm364_vm9 = vcmp.ge.f32.partialorder %v2013_v43, 0.0  ;;  %v3977_v1 = vld [vmem:[#allocation52_spill] sm:$0xff]  ;;  %v2477_v52 = vsel %vm352_vm13, %v1603_v6, %v376_v11 }
  0x6c   :  { %v380_v53 = vmul.f32 %v1611_v40, %v3971_v21  ;;  %3973 = vst [vmem:[#allocation50_spill] sm:$0xff] %v2466_v5  ;;  %3978 = vst [vmem:[#allocation52_spill] sm:$0xff] %v2477_v52  ;;  %v3979_v13 = vmax.f32 %v1829_v32, 0.0  ;;  %v3982_v59 = vmax.f32 %v1831_v33, 0.0  ;;  %vm365_vm10 = vcmp.ge.f32.partialorder %v2025_v29, 0.0  ;;  %v3986_v6 = vld [vmem:[#allocation82_spill] sm:$0xff] }
  0x6d   :  { %3965 = vst [vmem:[#allocation46_spill] sm:$0xff] %v2442_v4  ;;  %v2454_v9 = vsub.f32 %v3969_v14, %v3968_v54  ;;  %v2462_v4 = vsel %vm350_vm11, %v1599_v58, %v374_v62  ;;  %v2471_v14 = vsub.f32 %v3975_v55, %v3974_v2  ;;  %v1617_v54 = vpop.eup %1616  ;;  %v3981_v58 = vld [vmem:[#allocation79_spill] sm:$0xff]  ;;  %v2492_v2 = vsel %vm353_vm14, %v1605_v49, %v377_v3  ;;  %v3996_v3 = vld [vmem:[#allocation85_spill] sm:$0xff]  ;;  %v4032_v33 = vld [vmem:[#allocation70_spill] sm:$0xff] }
  0x6e   :  { %3972 = vst [vmem:[#allocation75_spill] sm:$0xff] %v2462_v4  ;;  %v2482_v18 = vsub.f32 %v3979_v13, %v2288_v42  ;;  %v2487_v62 = vsub.f32 %v3982_v59, %v3981_v58  ;;  %v1619_v51 = vpop.eup %1618  ;;  %3984 = vst [vmem:[#allocation103_spill] sm:$0xff] %v2492_v2  ;;  %v2496_v19 = vsel %vm354_vm15, %v1607_v30, %v378_v17  ;;  %v3987_v42 = vmax.f32 %v1846_v44, 0.0  ;;  %v3991_v59 = vld [vmem:[#allocation54_spill] sm:$0xff]  ;;  %v4016_v2 = vld [vmem:[#allocation64_spill] sm:$0xff] }
  0x6f   :  { %3970 = vst [vmem:[#allocation48_spill] sm:$0xff] %v2454_v9  ;;  %3976 = vst [vmem:[#allocation76_spill] sm:$0xff] %v2471_v14  ;;  %v381_v9 = vmul.f32 %v1613_v8, %v3977_v1  ;;  %v3989_v55 = vmax.f32 %v1848_v45, 0.0  ;;  %v1621_v58 = vpop.eup %1620  ;;  %v382_v52 = vmul.f32 %v1615_v22, %v3991_v59  ;;  %v2511_v20 = vsel %vm355_vm0, %v1609_v10, %v379_v12 }
  0x70   :  { %3980 = vst [vmem:[#allocation102_spill] sm:$0xff] %v2482_v18  ;;  %3983 = vst [vmem:[#allocation79_spill] sm:$0xff] %v2487_v62  ;;  %v2501_v11 = vsub.f32 %v3987_v42, %v3986_v6  ;;  %v3994_v49 = vmax.f32 %v1850_v46, 0.0  ;;  %v3997_v17 = vmax.f32 %v1992_v34, 0.0  ;;  %v1623_v42 = vpop.eup %1622  ;;  %vm366_vm11 = vcmp.ge.f32.partialorder %v2031_v61, 0.0  ;;  %v4041_v34 = vld [vmem:[#allocation77_spill] sm:$0xff] }
  0x71   :  { %3985 = vst [vmem:[#allocation104_spill] sm:$0xff] %v2496_v19  ;;  %v2506_v13 = vsub.f32 %v3989_v55, %v2306_v57  ;;  %3992 = vst [vmem:[#allocation54_spill] sm:$0xff] %v2511_v20  ;;  %v2526_v57 = vsel %vm356_vm1, %v1611_v40, %v380_v53  ;;  %v4001_v10 = vmax.f32 %v2013_v43, 0.0  ;;  %v4003_v55 = vmax.f32 %v2025_v29, 0.0 }
  0x72   :  { %3988 = vst [vmem:[#allocation82_spill] sm:$0xff] %v2501_v11  ;;  %v2516_v30 = vsub.f32 %v3994_v49, %v3993_v24  ;;  %v2521_v6 = vsub.f32 %v3997_v17, %v3996_v3  ;;  %3999 = vst [vmem:[#allocation106_spill] sm:$0xff] %v2526_v57  ;;  %v4005_v49 = vld [vmem:[#allocation43_spill] sm:$0xff]  ;;  %v1625_v3 = vpop.eup %1624  ;;  %v4006_v17 = vld [vmem:[#allocation56_spill] sm:$0xff]  ;;  %v2542_v26 = vsel %vm357_vm2, %v1613_v8, %v381_v9  ;;  %v4008_v40 = vmax.f32 %v2031_v61, 0.0 }
  0x73   :  { %3990 = vst [vmem:[#allocation105_spill] sm:$0xff] %v2506_v13  ;;  %v2531_v12 = vsub.f32 %v4001_v10, %v4000_v25  ;;  %v2536_v24 = vsub.f32 %v4003_v55, %v2335_v50  ;;  %1640 = vlog2.f32 %v4005_v49  ;;  %v383_v20 = vmul.f32 %v1617_v54, %v4006_v17  ;;  %4007 = vst [vmem:[#allocation43_spill] sm:$0xff] %v2542_v26  ;;  %v1627_v10 = vpop.eup %1626  ;;  %v4010_v50 = vld [vmem:[#allocation58_spill] sm:$0xff]  ;;  %v4013_v9 = vld [vmem:[#allocation44_spill] sm:$0xff] }
  0x74   :  { %3995 = vst [vmem:[#allocation84_spill] sm:$0xff] %v2516_v30  ;;  %3998 = vst [vmem:[#allocation85_spill] sm:$0xff] %v2521_v6  ;;  %v2547_v53 = vsub.f32 %v4008_v40, %v2344_v7  ;;  %v494_v25 = vmul.f32 -0.5, %v2095_v47  ;;  %vm367_vm12 = vcmp.ge.f32.partialorder %v2043_v36, 0.0  ;;  %vm368_vm13 = vcmp.ge.f32.partialorder %v2053_v15, 0.0  ;;  %v1629_v7 = vpop.eup %1628  ;;  %v4014_v40 = vld [vmem:[#allocation60_spill] sm:$0xff] }
  0x75   :  { %4002 = vst [vmem:[#allocation86_spill] sm:$0xff] %v2531_v12  ;;  %4004 = vst [vmem:[#allocation107_spill] sm:$0xff] %v2536_v24  ;;  %v384_v55 = vmul.f32 %v1619_v51, %v4010_v50  ;;  %v4011_v49 = vmax.f32 %v2043_v36, 0.0  ;;  %1642 = vlog2.f32 %v4013_v9  ;;  %v503_v8 = vmul.f32 -0.5, %v2097_v28  ;;  %v4015_v57 = vld [vmem:[#allocation62_spill] sm:$0xff]  ;;  %v4019_v9 = vld [vmem:[#allocation88_spill] sm:$0xff] }
  0x76   :  { %4009 = vst [vmem:[#allocation56_spill] sm:$0xff] %v2547_v53  ;;  %vm369_vm14 = vcmp.ge.f32.partialorder %v2058_v35, 0.0  ;;  %v385_v26 = vmul.f32 %v1621_v58, %v4014_v40  ;;  %v386_v19 = vmul.f32 %v1623_v42, %v4015_v57  ;;  %v387_v5 = vmul.f32 %v1625_v3, %v4016_v2  ;;  %v1631_v53 = vpop.eup %1630  ;;  %v4022_v12 = vld [vmem:[#allocation89_spill] sm:$0xff]  ;;  %v4027_v11 = vld [vmem:[#allocation90_spill] sm:$0xff] }
  0x77   :  { %v2556_v31 = vsub.f32 %v4011_v49, %v2348_v41  ;;  %v2566_v4 = vsel %vm358_vm3, %v1615_v22, %v382_v52  ;;  %vm370_vm15 = vcmp.ge.f32.partialorder %v2067_v0, 0.0  ;;  %v4018_v41 = vld [vmem:[#allocation66_spill] sm:$0xff]  ;;  %v4023_v6 = vmax.f32 %v2058_v35, 0.0  ;;  %v1633_v32 = vpop.eup %1632  ;;  %v4025_v52 = vld [vmem:[#allocation68_spill] sm:$0xff] }
  0x78   :  { %4017 = vst [vmem:[#allocation44_spill] sm:$0xff] %v2566_v4  ;;  %v388_v49 = vmul.f32 %v1627_v10, %v4018_v41  ;;  %v497_v13 = vand.u32 2147483647, %v2095_v47  ;;  %v389_v22 = vmul.f32 %v1629_v7, %v4025_v52  ;;  %v2584_v4 = vsel %vm359_vm4, %v1617_v54, %v383_v20 }
  0x79   :  { %4012 = vst [vmem:[#allocation58_spill] sm:$0xff] %v2556_v31  ;;  %v4020_v31 = vmax.f32 %v2053_v15, 0.0  ;;  %v2578_v30 = vsub.f32 %v4023_v6, %v4022_v12  ;;  %4026 = vst [vmem:[#allocation64_spill] sm:$0xff] %v2584_v4  ;;  %v4028_v62 = vmax.f32 %v2067_v0, 0.0  ;;  %v2593_v6 = vsel %vm360_vm5, %v1619_v51, %v384_v55  ;;  %v4046_v55 = vld [vmem:[#allocation49_spill] sm:$0xff] }
  0x7a   :  { %4030 = vst [vmem:[#allocation88_spill] sm:$0xff] %v2593_v6  ;;  %v504_v12 = vadd.f32 1.0, %v503_v8  ;;  %v390_v54 = vmul.f32 %v1631_v53, %v4032_v33  ;;  %v2600_v20 = vsel %vm361_vm6, %v1621_v58, %v385_v26  ;;  %v2608_v44 = vsel %vm363_vm8, %v1625_v3, %v387_v5  ;;  %v4039_v58 = vld [vmem:[#allocation47_spill] sm:$0xff]  ;;  %v4093_v6 = vld [vmem:[#allocation74_spill] sm:$0xff] }
  0x7b   :  { %v2573_v24 = vsub.f32 %v4020_v31, %v4019_v9  ;;  %4024 = vst [vmem:[#allocation62_spill] sm:$0xff] %v2578_v30  ;;  %v2589_v18 = vsub.f32 %v4028_v62, %v4027_v11  ;;  %v495_v31 = vadd.f32 1.0, %v494_v25  ;;  %v1635_v9 = vpop.eup %1634  ;;  %v506_v30 = vand.u32 2147483647, %v2097_v28  ;;  %4033 = vst [vmem:[#allocation89_spill] sm:$0xff] %v2600_v20  ;;  %v4047_v8 = vld [vmem:[#allocation83_spill] sm:$0xff] }
  0x7c   :  { %v1637_v14 = vpop.eup %1636  ;;  %v2604_v62 = vsel %vm362_vm7, %v1623_v42, %v386_v19  ;;  %4035 = vst [vmem:[#allocation90_spill] sm:$0xff] %v2608_v44  ;;  %v2612_v11 = vsel %vm364_vm9, %v1627_v10, %v388_v49  ;;  %vm2614_vm0 = vcmp.lt.f32.partialorder %v497_v13, 0.0004427343  ;;  %v512_v45 = vmul.f32 -0.5, %v2111_v27  ;;  %v4040_v19 = vld [vmem:[#allocation73_spill] sm:$0xff]  ;;  %v4043_v13 = vld [vmem:[#allocation80_spill] sm:$0xff] }
  0x7d   :  { %4021 = vst [vmem:[#allocation60_spill] sm:$0xff] %v2573_v24  ;;  %4029 = vst [vmem:[#allocation66_spill] sm:$0xff] %v2589_v18  ;;  %v4031_v24 = vld [vmem:[#allocation45_spill] sm:$0xff]  ;;  %v1639_v51 = vpop.eup %1638  ;;  %v521_v46 = vmul.f32 -0.5, %v2121_v38  ;;  %v391_v42 = vmul.f32 %v1633_v32, %v4040_v19  ;;  %v392_v5 = vmul.f32 %v1635_v9, %v4041_v34  ;;  %v2625_v3 = vsel %vm365_vm10, %v1629_v7, %v389_v22 }
  0x7e   :  { %1644 = vlog2.f32 %v4031_v24  ;;  %4034 = vst [vmem:[#allocation68_spill] sm:$0xff] %v2604_v62  ;;  %4036 = vst [vmem:[#allocation45_spill] sm:$0xff] %v2612_v11  ;;  %v2628_v43 = vmul.f32 %v2095_v47, %v495_v31  ;;  %v393_v26 = vmul.f32 %v1637_v14, %v4043_v13  ;;  %v2632_v25 = vmul.f32 %v2097_v28, %v504_v12  ;;  %v4049_v28 = vld [vmem:[#allocation51_spill] sm:$0xff] }
  0x7f   :  { %1646 = vlog2.f32 %v4039_v58  ;;  %4042 = vst [vmem:[#allocation70_spill] sm:$0xff] %v2625_v3  ;;  %vm2634_vm1 = vcmp.lt.f32.partialorder %v506_v30, 0.0004427343  ;;  %v394_v49 = vmul.f32 %v1639_v51, %v4047_v8  ;;  %v2642_v29 = vsel %vm366_vm11, %v1631_v53, %v390_v54  ;;  %v4052_v54 = vld [vmem:[#allocation53_spill] sm:$0xff] }
  0x80   :  { %1648 = vlog2.f32 %v4046_v55  ;;  %4048 = vst [vmem:[#allocation47_spill] sm:$0xff] %v2642_v29  ;;  %v515_v47 = vand.u32 2147483647, %v2111_v27  ;;  %v530_v7 = vmul.f32 -0.5, %v2127_v48  ;;  %v513_v22 = vadd.f32 1.0, %v512_v45  ;;  %v1641_v12 = vpop.eup %1640  ;;  %v4076_v3 = vld [vmem:[#allocation65_spill] sm:$0xff] }
  0x81   :  { %v522_v31 = vadd.f32 1.0, %v521_v46  ;;  %1650 = vlog2.f32 %v4049_v28  ;;  %v539_v30 = vmul.f32 -0.5, %v2132_v56  ;;  %v2650_v58 = vsel %vm367_vm12, %v1633_v32, %v391_v42 }
  0x82   :  { %4050 = vst [vmem:[#allocation73_spill] sm:$0xff] %v2650_v58  ;;  %v2654_v61 = vsel %vm368_vm13, %v1635_v9, %v392_v5  ;;  %v524_v53 = vand.u32 2147483647, %v2121_v38  ;;  %1652 = vlog2.f32 %v4052_v54  ;;  %v2660_v45 = vsel %vm369_vm14, %v1637_v14, %v393_v26  ;;  %v1643_v36 = vpop.eup %1642  ;;  %v4057_v14 = vld [vmem:[#allocation55_spill] sm:$0xff] }
  0x83   :  { %4051 = vst [vmem:[#allocation77_spill] sm:$0xff] %v2654_v61  ;;  %4053 = vst [vmem:[#allocation80_spill] sm:$0xff] %v2660_v45  ;;  %v531_v46 = vadd.f32 1.0, %v530_v7  ;;  %v533_v55 = vand.u32 2147483647, %v2127_v48  ;;  %v548_v28 = vmul.f32 -0.5, %v2139_v37  ;;  %v2666_v32 = vsel %vm370_vm15, %v1639_v51, %v394_v49 }
  0x84   :  { %4054 = vst [vmem:[#allocation49_spill] sm:$0xff] %v2666_v32  ;;  %v2668_v15 = vmul.f32 0.6931472, %v1641_v12  ;;  %vm2670_vm2 = vcmp.lt.f32.partialorder %v515_v47, 0.0004427343  ;;  %1654 = vlog2.f32 %v4057_v14  ;;  %v2677_v42 = vmul.f32 %v2111_v27, %v513_v22  ;;  %v4060_v7 = vld [vmem:[#allocation57_spill] sm:$0xff] }
  0x85   :  { %v542_v35 = vand.u32 2147483647, %v2132_v56  ;;  %v2680_v5 = vmul.f32 %v2121_v38, %v522_v31  ;;  %v540_v26 = vadd.f32 1.0, %v539_v30  ;;  %v557_v0 = vmul.f32 -0.5, %v3962_v23  ;;  %v4065_v54 = vld [vmem:[#allocation59_spill] sm:$0xff]  ;;  %v4068_v30 = vld [vmem:[#allocation61_spill] sm:$0xff] }
  0x86   :  { %v2683_v51 = vmul.f32 0.6931472, %v1643_v36  ;;  %vm2685_vm3 = vcmp.lt.f32.partialorder %v524_v53, 0.0004427343  ;;  %v551_v47 = vand.u32 2147483647, %v2139_v37  ;;  %1656 = vlog2.f32 %v4060_v7 }
  0x87   :  { %v2692_v12 = vmul.f32 %v2127_v48, %v531_v46  ;;  %vm2694_vm4 = vcmp.lt.f32.partialorder %v533_v55, 0.0004427343  ;;  %v549_v38 = vadd.f32 1.0, %v548_v28  ;;  %v566_v22 = vmul.f32 -0.5, %v3966_v39  ;;  %v4072_v58 = vld [vmem:[#allocation63_spill] sm:$0xff]  ;;  %v4137_v49 = vld [vmem:[#allocation97_spill] sm:$0xff] }
  0x88   :  { %vm2703_vm5 = vcmp.lt.f32.partialorder %v542_v35, 0.0004427343  ;;  %v560_v48 = vand.u32 2147483647, %v3962_v23  ;;  %1658 = vlog2.f32 %v4065_v54  ;;  %v2710_v46 = vmul.f32 %v2132_v56, %v540_v26  ;;  %v4140_v27 = vld [vmem:[#allocation98_spill] sm:$0xff] }
  0x89   :  { %v558_v55 = vadd.f32 1.0, %v557_v0  ;;  %v569_v28 = vand.u32 2147483647, %v3966_v39  ;;  %v575_v36 = vmul.f32 -0.5, %v3971_v21  ;;  %vm2718_vm6 = vcmp.lt.f32.partialorder %v551_v47, 0.0004427343 }
  0x8a   :  { %1660 = vlog2.f32 %v4068_v30  ;;  %v584_v56 = vmul.f32 -0.5, %v3977_v1  ;;  %v2727_v0 = vmul.f32 %v2139_v37, %v549_v38  ;;  %v567_v54 = vadd.f32 1.0, %v566_v22 }
  0x8b   :  { %v1645_v31 = vpop.eup %1644  ;;  %v578_v32 = vand.u32 2147483647, %v3971_v21  ;;  %vm2732_vm7 = vcmp.lt.f32.partialorder %v560_v48, 0.0004427343  ;;  %v4069_v47 = vmov 0  ;;  %v576_v35 = vadd.f32 1.0, %v575_v36 }
  0x8c   :  { %v1647_v14 = vpop.eup %1646  ;;  %v2724_v26 = vmul.f32 0.6931472, %v1645_v31  ;;  %v4070_v47 = vsel %vm2732_vm7, 4294967295, %v4069_v47  ;;  %1662 = vlog2.f32 %v4072_v58  ;;  %v593_v30 = vmul.f32 -0.5, %v3991_v59 }
  0x8d   :  { %v1649_v45 = vpop.eup %1648  ;;  %v2730_v61 = vmul.f32 0.6931472, %v1647_v14  ;;  %4071 = vst [vmem:[#allocation83_spill] sm:$0xff] %v4070_v47  ;;  %v2739_v31 = vmul.f32 %v3962_v23, %v558_v55  ;;  %vm2741_vm8 = vcmp.lt.f32.partialorder %v569_v28, 0.0004427343  ;;  %v4074_v37 = vmov 0 }
  0x8e   :  { %v4075_v37 = vsel %vm2741_vm8, 4294967295, %v4074_v37  ;;  %v585_v38 = vadd.f32 1.0, %v584_v56  ;;  %v587_v22 = vand.u32 2147483647, %v3977_v1  ;;  %v1651_v14 = vpop.eup %1650  ;;  %v2746_v48 = vmul.f32 0.6931472, %v1649_v45 }
  0x8f   :  { %4073 = vst [vmem:[#allocation51_spill] sm:$0xff] %v2739_v31  ;;  %v594_v29 = vadd.f32 1.0, %v593_v30  ;;  %1664 = vlog2.f32 %v4076_v3  ;;  %v602_v58 = vmul.f32 -0.5, %v4006_v17  ;;  %v1653_v36 = vpop.eup %1652  ;;  %v2754_v55 = vmul.f32 0.6931472, %v1651_v14  ;;  %v4080_v23 = vld [vmem:[#allocation67_spill] sm:$0xff] }
  0x90   :  { %v2757_v28 = vmul.f32 %v3966_v39, %v567_v54  ;;  %v596_v56 = vand.u32 2147483647, %v3991_v59  ;;  %v2765_v45 = vmul.f32 %v3971_v21, %v576_v35  ;;  %vm2767_vm9 = vcmp.lt.f32.partialorder %v578_v32, 0.0004427343 }
  0x91   :  { %v4077_v30 = vmov 0  ;;  %1666 = vlog2.f32 %v4080_v23  ;;  %v1655_v14 = vpop.eup %1654  ;;  %v2772_v18 = vmul.f32 0.6931472, %v1653_v36  ;;  %v2775_v39 = vmul.f32 %v3977_v1, %v585_v38  ;;  %v4085_v23 = vld [vmem:[#allocation69_spill] sm:$0xff] }
  0x92   :  { %v4078_v30 = vsel %vm2767_vm9, 4294967295, %v4077_v30  ;;  %vm2777_vm10 = vcmp.lt.f32.partialorder %v587_v22, 0.0004427343  ;;  %v4082_v54 = vmov 0  ;;  %v605_v3 = vand.u32 2147483647, %v4006_v17 }
  0x93   :  { %4079 = vst [vmem:[#allocation53_spill] sm:$0xff] %v4078_v30  ;;  %4081 = vst [vmem:[#allocation55_spill] sm:$0xff] %v2772_v18  ;;  %v4083_v54 = vsel %vm2777_vm10, 4294967295, %v4082_v54  ;;  %v611_v21 = vmul.f32 -0.5, %v4010_v50  ;;  %v2788_v35 = vmul.f32 %v3991_v59, %v594_v29  ;;  %v603_v36 = vadd.f32 1.0, %v602_v58  ;;  %v1657_v1 = vpop.eup %1656 }
  0x94   :  { %1668 = vlog2.f32 %v4085_v23  ;;  %v2795_v22 = vmul.f32 0.6931472, %v1655_v14  ;;  %vm2797_vm11 = vcmp.lt.f32.partialorder %v596_v56, 0.0004427343  ;;  %v4087_v11 = vmov 0  ;;  %v4089_v23 = vld [vmem:[#allocation71_spill] sm:$0xff] }
  0x95   :  { %4084 = vst [vmem:[#allocation57_spill] sm:$0xff] %v2788_v35  ;;  %v4088_v11 = vsel %vm2797_vm11, 4294967295, %v4087_v11  ;;  %v614_v32 = vand.u32 2147483647, %v4010_v50  ;;  %v620_v59 = vmul.f32 -0.5, %v4014_v40  ;;  %v612_v58 = vadd.f32 1.0, %v611_v21  ;;  %v1659_v62 = vpop.eup %1658 }
  0x96   :  { %4086 = vst [vmem:[#allocation59_spill] sm:$0xff] %v2795_v22  ;;  %v2803_v29 = vmul.f32 0.6931472, %v1657_v1  ;;  %1670 = vlog2.f32 %v4089_v23  ;;  %v629_v44 = vmul.f32 -0.5, %v4015_v57  ;;  %vm2811_vm12 = vcmp.lt.f32.partialorder %v605_v3, 0.0004427343 }
  0x97   :  { %v621_v38 = vadd.f32 1.0, %v620_v59  ;;  %v623_v20 = vand.u32 2147483647, %v4014_v40  ;;  %v2816_v1 = vmul.f32 0.6931472, %v1659_v62  ;;  %v2819_v21 = vmul.f32 %v4006_v17, %v603_v36  ;;  %v1661_v4 = vpop.eup %1660  ;;  %v4097_v3 = vld [vmem:[#allocation78_spill] sm:$0xff] }
  0x98   :  { %v632_v23 = vand.u32 2147483647, %v4015_v57  ;;  %1672 = vlog2.f32 %v4093_v6  ;;  %vm2827_vm13 = vcmp.lt.f32.partialorder %v614_v32, 0.0004427343  ;;  %v630_v59 = vadd.f32 1.0, %v629_v44 }
  0x99   :  { %4092 = vst [vmem:[#allocation61_spill] sm:$0xff] %v2816_v1  ;;  %v638_v62 = vmul.f32 -0.5, %v4016_v2  ;;  %v641_v17 = vand.u32 2147483647, %v4016_v2  ;;  %v2837_v36 = vmul.f32 0.6931472, %v1661_v4  ;;  %v2840_v18 = vmul.f32 %v4010_v50, %v612_v58  ;;  %v1663_v32 = vpop.eup %1662 }
  0x9a   :  { %1674 = vlog2.f32 %v4097_v3  ;;  %v2844_v22 = vmul.f32 %v4014_v40, %v621_v38  ;;  %vm2846_vm14 = vcmp.lt.f32.partialorder %v623_v20, 0.0004427343  ;;  %v647_v47 = vmul.f32 -0.5, %v4018_v41  ;;  %v4103_v40 = vld [vmem:[#allocation81_spill] sm:$0xff] }
  0x9b   :  { %4096 = vst [vmem:[#allocation63_spill] sm:$0xff] %v2837_v36  ;;  %v639_v31 = vadd.f32 1.0, %v638_v62  ;;  %v650_v6 = vand.u32 2147483647, %v4018_v41  ;;  %v2856_v50 = vmul.f32 0.6931472, %v1663_v32  ;;  %1676 = vlog2.f32 %v4103_v40 }
  0x9c   :  { %vm2858_vm15 = vcmp.lt.f32.partialorder %v632_v23, 0.0004427343  ;;  %v656_v20 = vmul.f32 -0.5, %v4025_v52  ;;  %v1665_v38 = vpop.eup %1664  ;;  %v2865_v3 = vmul.f32 %v4015_v57, %v630_v59  ;;  %vm2867_vm8 = vcmp.lt.f32.partialorder %v641_v17, 0.0004427343 }
  0x9d   :  { %4100 = vst [vmem:[#allocation65_spill] sm:$0xff] %v2856_v50  ;;  %v648_v30 = vadd.f32 1.0, %v647_v47  ;;  %v659_v32 = vand.u32 2147483647, %v4025_v52  ;;  %v2876_v4 = vmul.f32 0.6931472, %v1665_v38  ;;  %v2879_v40 = vmul.f32 %v4016_v2, %v639_v31 }
  0x9e   :  { %1678 = vlog2.f32 %v2311_v16  ;;  %v1667_v57 = vpop.eup %1666  ;;  %vm2882_vm9 = vcmp.lt.f32.partialorder %v650_v6, 0.0004427343  ;;  %v657_v47 = vadd.f32 1.0, %v656_v20  ;;  %v665_v17 = vmul.f32 -0.5, %v4032_v33  ;;  %v4160_v31 = vld [vmem:[#allocation76_spill] sm:$0xff] }
  0x9f   :  { %v668_v1 = vand.u32 2147483647, %v4032_v33  ;;  %v2892_v23 = vmul.f32 0.6931472, %v1667_v57  ;;  %v2895_v2 = vmul.f32 %v4018_v41, %v648_v30  ;;  %1680 = vlog2.f32 %v2324_v63 }
  0xa0   :  { %vm2898_vm10 = vcmp.lt.f32.partialorder %v659_v32, 0.0004427343  ;;  %v666_v6 = vadd.f32 1.0, %v665_v17  ;;  %v674_v20 = vmul.f32 -0.5, %v4040_v19  ;;  %v677_v36 = vand.u32 2147483647, %v4040_v19 }
  0xa1   :  { %v1669_v16 = vpop.eup %1668  ;;  %v607_v57 = vsel %vm2811_vm12, %v2819_v21, %v2876_v4  ;;  %1682 = vlog2.f32 %v2338_v60  ;;  %v683_v63 = vmul.f32 -0.5, %v4041_v34  ;;  %v658_v30 = vmul.f32 %v4025_v52, %v657_v47  ;;  %v4112_v60 = vld [vmem:[#allocation87_spill] sm:$0xff] }
  0xa2   :  { %v619_v38 = vmul.f32 0.6931472, %v1669_v16  ;;  %vm2911_vm11 = vcmp.lt.f32.partialorder %v668_v1, 0.0004427343  ;;  %v675_v17 = vadd.f32 1.0, %v674_v20  ;;  %v616_v14 = vsel %vm2827_vm13, %v2840_v18, %v2892_v23  ;;  %v4115_v20 = vld [vmem:[#allocation92_spill] sm:$0xff] }
  0xa3   :  { %v1671_v41 = vpop.eup %1670  ;;  %v686_v50 = vand.u32 2147483647, %v4041_v34  ;;  %v684_v4 = vadd.f32 1.0, %v683_v63  ;;  %1684 = vlog2.f32 %v4112_v60  ;;  %v667_v35 = vmul.f32 %v4032_v33, %v666_v6 }
  0xa4   :  { %v628_v21 = vmul.f32 0.6931472, %v1671_v41  ;;  %vm2922_vm12 = vcmp.lt.f32.partialorder %v677_v36, 0.0004427343  ;;  %v692_v1 = vmul.f32 -0.5, %v4043_v13  ;;  %v625_v56 = vsel %vm2846_vm14, %v2844_v22, %v619_v38 }
  0xa5   :  { %v1673_v16 = vpop.eup %1672  ;;  %v695_v47 = vand.u32 2147483647, %v4043_v13  ;;  %v676_v23 = vmul.f32 %v4040_v19, %v675_v17  ;;  %1686 = vlog2.f32 %v4115_v20  ;;  %vm2936_vm13 = vcmp.lt.f32.partialorder %v686_v50, 0.0004427343  ;;  %v4118_v17 = vld [vmem:[#allocation91_spill] sm:$0xff] }
  0xa6   :  { %v637_v18 = vmul.f32 0.6931472, %v1673_v16  ;;  %v634_v33 = vsel %vm2858_vm15, %v2865_v3, %v628_v21  ;;  %v693_v6 = vadd.f32 1.0, %v692_v1  ;;  %v701_v41 = vmul.f32 -0.5, %v4047_v8  ;;  %v4129_v1 = vld [vmem:[#allocation95_spill] sm:$0xff] }
  0xa7   :  { %v1675_v63 = vpop.eup %1674  ;;  %v704_v44 = vand.u32 2147483647, %v4047_v8  ;;  %v685_v38 = vmul.f32 %v4041_v34, %v684_v4  ;;  %v4119_v50 = vsel %vm2614_vm0, %v2628_v43, %v2668_v15  ;;  %vm2955_vm14 = vcmp.lt.f32.partialorder %v695_v47, 0.0004427343  ;;  %v4126_v4 = vld [vmem:[#allocation94_spill] sm:$0xff]  ;;  %v4146_v20 = vld [vmem:[#allocation51_spill] sm:$0xff] }
  0xa8   :  { %v643_v19 = vsel %vm2867_vm8, %v2879_v40, %v637_v18  ;;  %v646_v22 = vmul.f32 0.6931472, %v1675_v63  ;;  %v2952_v58 = vadd.f32 %v4119_v50, %v4118_v17  ;;  %v1677_v3 = vpop.eup %1676  ;;  %v694_v21 = vmul.f32 %v4043_v13, %v693_v6  ;;  %v4123_v40 = vld [vmem:[#allocation93_spill] sm:$0xff]  ;;  %v4147_v63 = vld [vmem:[#allocation59_spill] sm:$0xff] }
  0xa9   :  { %v702_v62 = vadd.f32 1.0, %v701_v41  ;;  %v4124_v34 = vsel %vm2634_vm1, %v2632_v25, %v2683_v51  ;;  %v4127_v43 = vsel %vm2670_vm2, %v2677_v42, %v2724_v26  ;;  %v655_v16 = vmul.f32 0.6931472, %v1677_v3  ;;  %v4132_v51 = vld [vmem:[#allocation96_spill] sm:$0xff]  ;;  %v4150_v41 = vld [vmem:[#allocation46_spill] sm:$0xff]  ;;  %v4157_v17 = vld [vmem:[#allocation61_spill] sm:$0xff] }
  0xaa   :  { %4120 = vst [vmem:[#allocation67_spill] sm:$0xff] %v2952_v58  ;;  %v2965_v24 = vadd.f32 %v4124_v34, %v4123_v40  ;;  %v2973_v13 = vadd.f32 %v4127_v43, %v4126_v4  ;;  %v652_v15 = vsel %vm2882_vm9, %v2895_v2, %v646_v22  ;;  %v4130_v25 = vsel %vm2685_vm3, %v2680_v5, %v2730_v61  ;;  %v4155_v22 = vld [vmem:[#allocation53_spill] sm:$0xff]  ;;  %v4187_v18 = vld [vmem:[#allocation99_spill] sm:$0xff] }
  0xab   :  { %v2984_v10 = vadd.f32 %v4130_v25, %v4129_v1  ;;  %v4133_v9 = vsel %vm2694_vm4, %v2692_v12, %v2746_v48  ;;  %v1679_v26 = vpop.eup %1678  ;;  %v703_v59 = vmul.f32 %v4047_v8, %v702_v62  ;;  %vm2995_vm0 = vcmp.lt.f32.partialorder %v704_v44, 0.0004427343  ;;  %v4141_v12 = vld [vmem:[#allocation55_spill] sm:$0xff]  ;;  %v4144_v8 = vld [vmem:[#allocation101_spill] sm:$0xff]  ;;  %v4154_v44 = vld [vmem:[#allocation48_spill] sm:$0xff] }
  0xac   :  { %4125 = vst [vmem:[#allocation69_spill] sm:$0xff] %v2965_v24  ;;  %4128 = vst [vmem:[#allocation71_spill] sm:$0xff] %v2973_v13  ;;  %v2992_v42 = vadd.f32 %v4133_v9, %v4132_v51  ;;  %v4138_v61 = vsel %vm2703_vm5, %v2710_v46, %v2754_v55  ;;  %v4142_v48 = vsel %vm2718_vm6, %v2727_v0, %v4141_v12  ;;  %v664_v55 = vmul.f32 0.6931472, %v1679_v26  ;;  %v1681_v62 = vpop.eup %1680  ;;  %v4168_v34 = vld [vmem:[#allocation65_spill] sm:$0xff]  ;;  %v4173_v1 = vld [vmem:[#allocation82_spill] sm:$0xff] }
  0xad   :  { %4131 = vst [vmem:[#allocation74_spill] sm:$0xff] %v2984_v10  ;;  %v3005_v5 = vadd.f32 %v4138_v61, %v4137_v49  ;;  %v3013_v47 = vadd.f32 %v4142_v48, %v4140_v27  ;;  %v4148_v6 = vsel %vm2732_vm7, %v4146_v20, %v4147_v63  ;;  %v661_v46 = vsel %vm2898_vm10, %v658_v30, %v655_v16  ;;  %v4162_v30 = vld [vmem:[#allocation63_spill] sm:$0xff]  ;;  %v4175_v51 = vld [vmem:[#allocation105_spill] sm:$0xff]  ;;  %v4177_v26 = vld [vmem:[#allocation84_spill] sm:$0xff] }
  0xae   :  { %4134 = vst [vmem:[#allocation78_spill] sm:$0xff] %v2992_v42  ;;  %v3021_v53 = vadd.f32 %v4148_v6, %v4144_v8  ;;  %vm4151_vm1 = vnez %v4075_v37  ;;  %vm4156_vm2 = vnez %v4155_v22  ;;  %vm4161_vm3 = vnez %v4083_v54  ;;  %v1683_v49 = vpop.eup %1682  ;;  %v4179_v61 = vld [vmem:[#allocation85_spill] sm:$0xff]  ;;  %v4181_v12 = vld [vmem:[#allocation86_spill] sm:$0xff]  ;;  %v4183_v48 = vld [vmem:[#allocation107_spill] sm:$0xff] }
  0xaf   :  { %4139 = vst [vmem:[#allocation81_spill] sm:$0xff] %v3005_v5  ;;  %4143 = vst [vmem:[#allocation87_spill] sm:$0xff] %v3013_v47  ;;  %v4152_v7 = vsel %vm4151_vm1, %v2757_v28, %v2803_v29  ;;  %v4158_v50 = vsel %vm4156_vm2, %v2765_v45, %v4157_v17  ;;  %v4163_v37 = vsel %vm4161_vm3, %v2775_v39, %v4162_v30  ;;  %v4165_v28 = vld [vmem:[#allocation102_spill] sm:$0xff]  ;;  %vm4166_vm4 = vnez %v4088_v11  ;;  %v4167_v29 = vld [vmem:[#allocation57_spill] sm:$0xff] }
  0xb0   :  { %4149 = vst [vmem:[#allocation92_spill] sm:$0xff] %v3021_v53  ;;  %v3031_v0 = vadd.f32 %v4152_v7, %v4150_v41  ;;  %v3039_v3 = vadd.f32 %v4158_v50, %v4154_v44  ;;  %v3047_v40 = vadd.f32 %v4163_v37, %v4160_v31  ;;  %v4169_v4 = vsel %vm4166_vm4, %v4167_v29, %v4168_v34  ;;  %v4171_v45 = vld [vmem:[#allocation79_spill] sm:$0xff]  ;;  %v4185_v8 = vld [vmem:[#allocation56_spill] sm:$0xff]  ;;  %v1685_v6 = vpop.eup %1684  ;;  %v4193_v44 = vld [vmem:[#allocation50_spill] sm:$0xff] }
  0xb1   :  { %v3055_v43 = vadd.f32 %v4169_v4, %v4165_v28  ;;  %v3058_v16 = vadd.f32 %v607_v57, %v4171_v45  ;;  %v3061_v25 = vadd.f32 %v616_v14, %v4173_v1  ;;  %v670_v54 = vsel %vm2911_vm11, %v667_v35, %v664_v55  ;;  %v4188_v20 = vld [vmem:[#allocation100_spill] sm:$0xff]  ;;  %v4192_v7 = vld [vmem:[#allocation75_spill] sm:$0xff]  ;;  %v4199_v4 = vld [vmem:[#allocation54_spill] sm:$0xff] }
  0xb2   :  { %4153 = vst [vmem:[#allocation91_spill] sm:$0xff] %v3031_v0  ;;  %4159 = vst [vmem:[#allocation93_spill] sm:$0xff] %v3039_v3  ;;  %v673_v39 = vmul.f32 0.6931472, %v1681_v62  ;;  %v3066_v9 = vadd.f32 %v625_v56, %v4175_v51  ;;  %v3069_v11 = vadd.f32 %v634_v33, %v4177_v26  ;;  %v3072_v27 = vadd.f32 %v643_v19, %v4179_v61  ;;  %v4189_v19 = vld [vmem:[#allocation58_spill] sm:$0xff]  ;;  %v4195_v62 = vld [vmem:[#allocation103_spill] sm:$0xff]  ;;  %v1687_v30 = vpop.eup %1686 }
  0xb3   :  { %4164 = vst [vmem:[#allocation94_spill] sm:$0xff] %v3047_v40  ;;  %4170 = vst [vmem:[#allocation95_spill] sm:$0xff] %v3055_v43  ;;  %v3075_v57 = vadd.f32 %v652_v15, %v4181_v12  ;;  %v3078_v14 = vadd.f32 %v661_v46, %v4183_v48  ;;  %v3081_v32 = vadd.f32 %v670_v54, %v4185_v8  ;;  %v682_v56 = vmul.f32 0.6931472, %v1683_v49  ;;  %v4191_v15 = vld [vmem:[#allocation72_spill] sm:$0xff]  ;;  %v4200_v1 = vld [vmem:[#allocation106_spill] sm:$0xff] }
  0xb4   :  { %4172 = vst [vmem:[#allocation96_spill] sm:$0xff] %v3058_v16  ;;  %4174 = vst [vmem:[#allocation97_spill] sm:$0xff] %v3061_v25  ;;  %v679_v35 = vsel %vm2922_vm12, %v676_v23, %v673_v39  ;;  %v731_v33 = vmul.f32 2.0, %v4187_v18  ;;  %v732_v63 = vmul.f32 2.0, %v4188_v20  ;;  %v733_v41 = vmul.f32 2.0, %v4191_v15  ;;  %v4194_v23 = vld [vmem:[#allocation52_spill] sm:$0xff] }
  0xb5   :  { %4176 = vst [vmem:[#allocation98_spill] sm:$0xff] %v3066_v9  ;;  %4178 = vst [vmem:[#allocation55_spill] sm:$0xff] %v3069_v11  ;;  %v3088_v55 = vadd.f32 %v679_v35, %v4189_v19  ;;  %v734_v46 = vmul.f32 2.0, %v4192_v7  ;;  %v735_v22 = vmul.f32 2.0, %v4193_v44  ;;  %v688_v17 = vsel %vm2936_vm13, %v685_v38, %v682_v56  ;;  %v4196_v37 = vld [vmem:[#allocation60_spill] sm:$0xff]  ;;  %v4201_v38 = vld [vmem:[#allocation43_spill] sm:$0xff] }
  0xb6   :  { %4180 = vst [vmem:[#allocation101_spill] sm:$0xff] %v3072_v27  ;;  %4182 = vst [vmem:[#allocation83_spill] sm:$0xff] %v3075_v57  ;;  %v691_v52 = vmul.f32 0.6931472, %v1685_v6  ;;  %v736_v50 = vmul.f32 2.0, %v4194_v23  ;;  %v737_v31 = vmul.f32 2.0, %v4195_v62  ;;  %v3098_v28 = vadd.f32 %v688_v17, %v4196_v37 }
  0xb7   :  { %4184 = vst [vmem:[#allocation51_spill] sm:$0xff] %v3078_v14  ;;  %4186 = vst [vmem:[#allocation59_spill] sm:$0xff] %v3081_v32  ;;  %v4198_v29 = vld [vmem:[#allocation104_spill] sm:$0xff]  ;;  %v739_v45 = vmul.f32 2.0, %v4199_v4  ;;  %v740_v54 = vmul.f32 2.0, %v4200_v1  ;;  %v741_v51 = vmul.f32 2.0, %v4201_v38 }
  0xb8   :  { %4190 = vst [vmem:[#allocation46_spill] sm:$0xff] %v3088_v55  ;;  %4197 = vst [vmem:[#allocation48_spill] sm:$0xff] %v3098_v28  ;;  %v738_v34 = vmul.f32 2.0, %v4198_v29  ;;  %v697_v39 = vsel %vm2955_vm14, %v694_v21, %v691_v52  ;;  %v700_v36 = vmul.f32 0.6931472, %v1687_v30  ;;  %v4202_v26 = vld [vmem:[#allocation44_spill] sm:$0xff] }
  0xb9   :  { %v742_v49 = vmul.f32 2.0, %v4202_v26  ;;  %v4203_v61 = vld [vmem:[#allocation62_spill] sm:$0xff]  ;;  %v4205_v48 = vld [vmem:[#allocation64_spill] sm:$0xff]  ;;  %v4207_v6 = vld [vmem:[#allocation89_spill] sm:$0xff]  ;;  %v755_v16 = vsub.f32 1.0, %v731_v33  ;;  %v756_v43 = vsub.f32 1.0, %v732_v63 }
  0xba   :  { %v3108_v12 = vadd.f32 %v697_v39, %v4203_v61  ;;  %v743_v8 = vmul.f32 2.0, %v4205_v48  ;;  %v4206_v35 = vld [vmem:[#allocation88_spill] sm:$0xff]  ;;  %v745_v19 = vmul.f32 2.0, %v4207_v6  ;;  %v706_v17 = vsel %vm2995_vm0, %v703_v59, %v700_v36  ;;  %v4209_v21 = vld [vmem:[#allocation90_spill] sm:$0xff]  ;;  %v4210_v30 = vld [vmem:[#allocation45_spill] sm:$0xff] }
  0xbb   :  { %v744_v56 = vmul.f32 2.0, %v4206_v35  ;;  %v4208_v37 = vld [vmem:[#allocation68_spill] sm:$0xff]  ;;  %v747_v52 = vmul.f32 2.0, %v4209_v21  ;;  %v748_v28 = vmul.f32 2.0, %v4210_v30  ;;  %v4211_v55 = vld [vmem:[#allocation66_spill] sm:$0xff]  ;;  %v4215_v57 = vld [vmem:[#allocation73_spill] sm:$0xff] }
  0xbc   :  { %4204 = vst [vmem:[#allocation53_spill] sm:$0xff] %v3108_v12  ;;  %v746_v60 = vmul.f32 2.0, %v4208_v37  ;;  %v3119_v32 = vadd.f32 %v706_v17, %v4211_v55  ;;  %v4213_v39 = vld [vmem:[#allocation70_spill] sm:$0xff]  ;;  %v4214_v12 = vld [vmem:[#allocation47_spill] sm:$0xff]  ;;  %v751_v27 = vmul.f32 2.0, %v4215_v57  ;;  %v4216_v11 = vld [vmem:[#allocation77_spill] sm:$0xff] }
  0xbd   :  { %v749_v61 = vmul.f32 2.0, %v4213_v39  ;;  %v750_v14 = vmul.f32 2.0, %v4214_v12  ;;  %v752_v9 = vmul.f32 2.0, %v4216_v11  ;;  %v4217_v25 = vld [vmem:[#allocation80_spill] sm:$0xff]  ;;  %v4218_v59 = vld [vmem:[#allocation49_spill] sm:$0xff]  ;;  %v757_v40 = vsub.f32 1.0, %v733_v41 }
  0xbe   :  { %4212 = vst [vmem:[#allocation61_spill] sm:$0xff] %v3119_v32  ;;  %v753_v2 = vmul.f32 2.0, %v4217_v25  ;;  %v754_v36 = vmul.f32 2.0, %v4218_v59  ;;  %v758_v3 = vsub.f32 1.0, %v734_v46  ;;  %v759_v0 = vsub.f32 1.0, %v735_v22  ;;  %v4219_v22 = vld [vmem:[#allocation19_spill] sm:$0xff] }
  0xbf   :  { %v760_v53 = vsub.f32 1.0, %v736_v50  ;;  %v761_v55 = vsub.f32 1.0, %v737_v31  ;;  %v762_v17 = vsub.f32 1.0, %v738_v34  ;;  %v763_v32 = vsub.f32 1.0, %v739_v45  ;;  %v4220_v31 = vld [vmem:[#allocation20_spill] sm:$0xff]  ;;  %v4221_v45 = vld [vmem:[#allocation21_spill] sm:$0xff] }
  0xc0   :  { %v764_v47 = vsub.f32 1.0, %v740_v54  ;;  %v765_v5 = vsub.f32 1.0, %v741_v51  ;;  %v766_v42 = vsub.f32 1.0, %v742_v49  ;;  %v767_v10 = vsub.f32 1.0, %v743_v8  ;;  %v4222_v51 = vld [vmem:[#allocation22_spill] sm:$0xff]  ;;  %v4223_v8 = vld [vmem:[#allocation23_spill] sm:$0xff] }
  0xc1   :  { %v768_v13 = vsub.f32 1.0, %v744_v56  ;;  %v769_v24 = vsub.f32 1.0, %v745_v19  ;;  %v770_v58 = vsub.f32 1.0, %v746_v60  ;;  %v771_v11 = vsub.f32 1.0, %v747_v52  ;;  %v4224_v19 = vld [vmem:[#allocation24_spill] sm:$0xff]  ;;  %v4225_v52 = vld [vmem:[#allocation25_spill] sm:$0xff] }
  0xc2   :  { %v772_v25 = vsub.f32 1.0, %v748_v28  ;;  %v773_v57 = vsub.f32 1.0, %v749_v61  ;;  %v774_v59 = vsub.f32 1.0, %v750_v14  ;;  %v775_v33 = vsub.f32 1.0, %v751_v27  ;;  %v4226_v61 = vld [vmem:[#allocation26_spill] sm:$0xff]  ;;  %v4227_v27 = vld [vmem:[#allocation27_spill] sm:$0xff] }
  0xc3   :  { %v776_v63 = vsub.f32 1.0, %v752_v9  ;;  %v777_v41 = vsub.f32 1.0, %v753_v2  ;;  %v778_v46 = vsub.f32 1.0, %v754_v36  ;;  %v779_v50 = vmul.f32 %v4219_v22, %v755_v16  ;;  %v4228_v2 = vld [vmem:[#allocation28_spill] sm:$0xff]  ;;  %v4229_v12 = vld [vmem:[#allocation29_spill] sm:$0xff]  ;;  %v4230_v22 = vld [vmem:[#allocation30_spill] sm:$0xff] }
  0xc4   :  { %v780_v34 = vmul.f32 %v4220_v31, %v756_v43  ;;  %v781_v54 = vmul.f32 %v4221_v45, %v757_v40  ;;  %v782_v49 = vmul.f32 %v4222_v51, %v758_v3  ;;  %v783_v56 = vmul.f32 %v4223_v8, %v759_v0  ;;  %v4231_v31 = vld [vmem:[#allocation31_spill] sm:$0xff]  ;;  %v4232_v45 = vld [vmem:[#allocation32_spill] sm:$0xff]  ;;  %v4233_v51 = vld [vmem:[#allocation33_spill] sm:$0xff] }
  0xc5   :  { %v784_v60 = vmul.f32 %v4224_v19, %v760_v53  ;;  %v785_v28 = vmul.f32 %v4225_v52, %v761_v55  ;;  %v786_v14 = vmul.f32 %v4226_v61, %v762_v17  ;;  %v787_v9 = vmul.f32 %v4227_v27, %v763_v32  ;;  %v4234_v8 = vld [vmem:[#allocation34_spill] sm:$0xff]  ;;  %v4235_v19 = vld [vmem:[#allocation35_spill] sm:$0xff]  ;;  %v4236_v52 = vld [vmem:[#allocation36_spill] sm:$0xff] }
  0xc6   :  { %v788_v36 = vmul.f32 %v4228_v2, %v764_v47  ;;  %v789_v16 = vmul.f32 %v4229_v12, %v765_v5  ;;  %v790_v43 = vmul.f32 %v4230_v22, %v766_v42  ;;  %v791_v40 = vmul.f32 %v4231_v31, %v767_v10  ;;  %v4237_v61 = vld [vmem:[#allocation37_spill] sm:$0xff]  ;;  %v4238_v27 = vld [vmem:[#allocation38_spill] sm:$0xff]  ;;  %v4239_v2 = vld [vmem:[#allocation39_spill] sm:$0xff] }
  0xc7   :  { %v792_v3 = vmul.f32 %v4232_v45, %v768_v13  ;;  %v793_v0 = vmul.f32 %v4233_v51, %v769_v24  ;;  %v794_v53 = vmul.f32 %v4234_v8, %v770_v58  ;;  %v795_v55 = vmul.f32 %v4235_v19, %v771_v11  ;;  %v4240_v12 = vld [vmem:[#allocation40_spill] sm:$0xff]  ;;  %v4241_v22 = vld [vmem:[#allocation41_spill] sm:$0xff]  ;;  %v4242_v31 = vld [vmem:[#allocation42_spill] sm:$0xff] }
  0xc8   :  { %v796_v17 = vmul.f32 %v4236_v52, %v772_v25  ;;  %v797_v32 = vmul.f32 %v4237_v61, %v773_v57  ;;  %v798_v47 = vmul.f32 %v4238_v27, %v774_v59  ;;  %v799_v5 = vmul.f32 %v4239_v2, %v775_v33 }
  0xc9   :  { %v800_v42 = vmul.f32 %v4240_v12, %v776_v63  ;;  %v801_v10 = vmul.f32 %v4241_v22, %v777_v41  ;;  %v802_v13 = vmul.f32 %v4242_v31, %v778_v46  ;;  %v803_v24 = vadd.f32 %v779_v50, %v4187_v18  ;;  %v4243_v50 = vld [vmem:[#allocation47_spill] sm:$0xff] }
  0xca   :  { %v804_v58 = vadd.f32 %v780_v34, %v4188_v20  ;;  %v805_v11 = vadd.f32 %v781_v54, %v4191_v15  ;;  %v806_v25 = vadd.f32 %v782_v49, %v4192_v7  ;;  %v807_v57 = vadd.f32 %v783_v56, %v4193_v44  ;;  %v4244_v34 = vld [vmem:[#allocation73_spill] sm:$0xff]  ;;  %v4246_v49 = vld [vmem:[#allocation80_spill] sm:$0xff] }
  0xcb   :  { %v808_v59 = vadd.f32 %v784_v60, %v4194_v23  ;;  %v809_v33 = vadd.f32 %v785_v28, %v4195_v62  ;;  %v810_v63 = vadd.f32 %v786_v14, %v4198_v29  ;;  %v811_v41 = vadd.f32 %v787_v9, %v4199_v4  ;;  %v4245_v54 = vld [vmem:[#allocation77_spill] sm:$0xff] }
  0xcc   :  { %v812_v46 = vadd.f32 %v788_v36, %v4200_v1  ;;  %v813_v18 = vadd.f32 %v789_v16, %v4201_v38  ;;  %v814_v20 = vadd.f32 %v790_v43, %v4202_v26  ;;  %v815_v15 = vadd.f32 %v791_v40, %v4205_v48  ;;  %v4247_v56 = vld [vmem:[#allocation49_spill] sm:$0xff] }
  0xcd   :  { %v816_v7 = vadd.f32 %v792_v3, %v4206_v35  ;;  %v817_v44 = vadd.f32 %v793_v0, %v4207_v6  ;;  %v818_v23 = vadd.f32 %v794_v53, %v4208_v37  ;;  %v819_v62 = vadd.f32 %v795_v55, %v4209_v21 }
  0xce   :  { %v820_v29 = vadd.f32 %v796_v17, %v4210_v30  ;;  %v821_v4 = vadd.f32 %v797_v32, %v4213_v39  ;;  %v822_v1 = vadd.f32 %v798_v47, %v4243_v50  ;;  %v823_v38 = vadd.f32 %v799_v5, %v4244_v34 }
  0xcf   :  { %v824_v26 = vadd.f32 %v800_v42, %v4245_v54  ;;  %v825_v48 = vadd.f32 %v801_v10, %v4246_v49  ;;  %v826_v35 = vadd.f32 %v802_v13, %v4247_v56  ;;  %v3175_v60 = vmul.f32 %v803_v24, %v803_v24  ;;  %v4252_v24 = vld [vmem:[#allocation19_spill] sm:$0xff] }
  0xd0   :  { %v3177_v6 = vmul.f32 %v804_v58, %v804_v58  ;;  %v3179_v37 = vmul.f32 %v805_v11, %v805_v11  ;;  %v3181_v21 = vmul.f32 %v806_v25, %v806_v25  ;;  %v3183_v30 = vmul.f32 %v807_v57, %v807_v57  ;;  %v4253_v11 = vld [vmem:[#allocation20_spill] sm:$0xff]  ;;  %v4254_v57 = vld [vmem:[#allocation21_spill] sm:$0xff] }
  0xd1   :  { %v3185_v39 = vmul.f32 %v808_v59, %v808_v59  ;;  %v3187_v28 = vmul.f32 %v809_v33, %v809_v33  ;;  %v3189_v14 = vmul.f32 %v810_v63, %v810_v63  ;;  %v3191_v9 = vmul.f32 %v811_v41, %v811_v41  ;;  %v4255_v33 = vld [vmem:[#allocation22_spill] sm:$0xff]  ;;  %v4256_v41 = vld [vmem:[#allocation23_spill] sm:$0xff] }
  0xd2   :  { %v3193_v36 = vmul.f32 %v812_v46, %v812_v46  ;;  %v3195_v16 = vmul.f32 %v813_v18, %v813_v18  ;;  %v3197_v43 = vmul.f32 %v814_v20, %v814_v20  ;;  %v3199_v40 = vmul.f32 %v815_v15, %v815_v15  ;;  %v4257_v18 = vld [vmem:[#allocation24_spill] sm:$0xff]  ;;  %v4258_v15 = vld [vmem:[#allocation25_spill] sm:$0xff] }
  0xd3   :  { %v3201_v3 = vmul.f32 %v816_v7, %v816_v7  ;;  %v3203_v0 = vmul.f32 %v817_v44, %v817_v44  ;;  %v3205_v53 = vmul.f32 %v818_v23, %v818_v23  ;;  %v3207_v55 = vmul.f32 %v819_v62, %v819_v62  ;;  %v4259_v44 = vld [vmem:[#allocation26_spill] sm:$0xff]  ;;  %v4260_v62 = vld [vmem:[#allocation27_spill] sm:$0xff] }
  0xd4   :  { %v3209_v17 = vmul.f32 %v820_v29, %v820_v29  ;;  %v3211_v32 = vmul.f32 %v821_v4, %v821_v4  ;;  %v3213_v47 = vmul.f32 %v822_v1, %v822_v1  ;;  %v3215_v5 = vmul.f32 %v823_v38, %v823_v38  ;;  %v4261_v4 = vld [vmem:[#allocation28_spill] sm:$0xff]  ;;  %v4262_v1 = vld [vmem:[#allocation29_spill] sm:$0xff]  ;;  %v4263_v38 = vld [vmem:[#allocation30_spill] sm:$0xff] }
  0xd5   :  { %v3217_v42 = vmul.f32 %v824_v26, %v824_v26  ;;  %v3219_v10 = vmul.f32 %v825_v48, %v825_v48  ;;  %v3221_v13 = vmul.f32 %v826_v35, %v826_v35  ;;  %v851_v58 = vmul.f32 -0.5, %v4252_v24  ;;  %v4264_v26 = vld [vmem:[#allocation31_spill] sm:$0xff] }
  0xd6   :  { %4248 = vst [vmem:[#allocation76_spill] sm:$0xff] %v3215_v5  ;;  %v852_v25 = vmul.f32 -0.5, %v4253_v11  ;;  %v853_v59 = vmul.f32 -0.5, %v4254_v57  ;;  %v854_v63 = vmul.f32 -0.5, %v4255_v33  ;;  %v855_v46 = vmul.f32 -0.5, %v4256_v41 }
  0xd7   :  { %4249 = vst [vmem:[#allocation63_spill] sm:$0xff] %v3217_v42  ;;  %4250 = vst [vmem:[#allocation102_spill] sm:$0xff] %v3219_v10  ;;  %v856_v20 = vmul.f32 -0.5, %v4257_v18  ;;  %v857_v7 = vmul.f32 -0.5, %v4258_v15  ;;  %v858_v23 = vmul.f32 -0.5, %v4259_v44  ;;  %v859_v29 = vmul.f32 -0.5, %v4260_v62 }
  0xd8   :  { %4251 = vst [vmem:[#allocation57_spill] sm:$0xff] %v3221_v13  ;;  %v860_v50 = vmul.f32 -0.5, %v4261_v4  ;;  %v861_v34 = vmul.f32 -0.5, %v4262_v1  ;;  %v862_v54 = vmul.f32 -0.5, %v4263_v38  ;;  %v863_v49 = vmul.f32 -0.5, %v4264_v26 }
  0xd9   :  { %v864_v48 = vmul.f32 -0.5, %v4232_v45  ;;  %v865_v56 = vmul.f32 -0.5, %v4233_v51  ;;  %v866_v35 = vmul.f32 -0.5, %v4234_v8  ;;  %v867_v15 = vmul.f32 -0.5, %v4235_v19 }
  0xda   :  { %v868_v44 = vmul.f32 -0.5, %v4236_v52  ;;  %v869_v62 = vmul.f32 -0.5, %v4237_v61  ;;  %v870_v4 = vmul.f32 -0.5, %v4238_v27  ;;  %v871_v1 = vmul.f32 -0.5, %v4239_v2 }
  0xdb   :  { %v872_v38 = vmul.f32 -0.5, %v4240_v12  ;;  %v873_v26 = vmul.f32 -0.5, %v4241_v22  ;;  %v874_v45 = vmul.f32 -0.5, %v4242_v31  ;;  %v875_v18 = vadd.f32 0.75, %v851_v58 }
  0xdc   :  { %v876_v51 = vadd.f32 0.75, %v852_v25  ;;  %v877_v41 = vadd.f32 0.75, %v853_v59  ;;  %v878_v8 = vadd.f32 0.75, %v854_v63  ;;  %v879_v33 = vadd.f32 0.75, %v855_v46 }
  0xdd   :  { %v880_v19 = vadd.f32 0.75, %v856_v20  ;;  %v881_v57 = vadd.f32 0.75, %v857_v7  ;;  %v882_v52 = vadd.f32 0.75, %v858_v23  ;;  %v883_v11 = vadd.f32 0.75, %v859_v29 }
  0xde   :  { %v884_v61 = vadd.f32 0.75, %v860_v50  ;;  %v885_v24 = vadd.f32 0.75, %v861_v34  ;;  %v886_v27 = vadd.f32 0.75, %v862_v54  ;;  %v887_v13 = vadd.f32 0.75, %v863_v49  ;;  %v4281_v34 = vld [vmem:[#allocation96_spill] sm:$0xff]  ;;  %v4282_v54 = vld [vmem:[#allocation97_spill] sm:$0xff] }
  0xdf   :  { %v888_v2 = vadd.f32 0.75, %v864_v48  ;;  %v889_v10 = vadd.f32 0.75, %v865_v56  ;;  %v890_v12 = vadd.f32 0.75, %v866_v35  ;;  %v891_v42 = vadd.f32 0.75, %v867_v15  ;;  %v4283_v49 = vld [vmem:[#allocation98_spill] sm:$0xff]  ;;  %v4284_v56 = vld [vmem:[#allocation55_spill] sm:$0xff] }
  0xe0   :  { %v892_v22 = vadd.f32 0.75, %v868_v44  ;;  %v893_v5 = vadd.f32 0.75, %v869_v62  ;;  %v894_v31 = vadd.f32 0.75, %v870_v4  ;;  %v895_v58 = vadd.f32 0.75, %v871_v1  ;;  %v4280_v4 = vld [vmem:[#allocation95_spill] sm:$0xff] }
  0xe1   :  { %v896_v25 = vadd.f32 0.75, %v872_v38  ;;  %v897_v59 = vadd.f32 0.75, %v873_v26  ;;  %v898_v63 = vadd.f32 0.75, %v874_v45  ;;  %v899_v46 = vmul.f32 %v875_v18, %v3175_v60 }
  0xe2   :  { %v900_v20 = vmul.f32 %v876_v51, %v3177_v6  ;;  %v901_v7 = vmul.f32 %v877_v41, %v3179_v37  ;;  %v902_v23 = vmul.f32 %v878_v8, %v3181_v21  ;;  %v903_v29 = vmul.f32 %v879_v33, %v3183_v30  ;;  %v4279_v41 = vld [vmem:[#allocation94_spill] sm:$0xff] }
  0xe3   :  { %v904_v50 = vmul.f32 %v880_v19, %v3185_v39  ;;  %v905_v15 = vmul.f32 %v881_v57, %v3187_v28  ;;  %v906_v44 = vmul.f32 %v882_v52, %v3189_v14  ;;  %v907_v62 = vmul.f32 %v883_v11, %v3191_v9  ;;  %v4265_v39 = vld [vmem:[#allocation76_spill] sm:$0xff]  ;;  %v4266_v14 = vld [vmem:[#allocation63_spill] sm:$0xff]  ;;  %v4267_v9 = vld [vmem:[#allocation102_spill] sm:$0xff] }
  0xe4   :  { %v908_v45 = vmul.f32 %v884_v61, %v3193_v36  ;;  %v909_v60 = vmul.f32 %v885_v24, %v3195_v16  ;;  %v910_v51 = vmul.f32 %v886_v27, %v3197_v43  ;;  %v911_v6 = vmul.f32 %v887_v13, %v3199_v40  ;;  %v4268_v16 = vld [vmem:[#allocation57_spill] sm:$0xff]  ;;  %v4269_v43 = vld [vmem:[#allocation67_spill] sm:$0xff] }
  0xe5   :  { %v912_v8 = vmul.f32 %v888_v2, %v3201_v3  ;;  %v913_v37 = vmul.f32 %v889_v10, %v3203_v0  ;;  %v914_v19 = vmul.f32 %v890_v12, %v3205_v53  ;;  %v915_v21 = vmul.f32 %v891_v42, %v3207_v55  ;;  %v4270_v12 = vld [vmem:[#allocation69_spill] sm:$0xff]  ;;  %v4271_v0 = vld [vmem:[#allocation71_spill] sm:$0xff]  ;;  %v4272_v53 = vld [vmem:[#allocation74_spill] sm:$0xff] }
  0xe6   :  { %v916_v52 = vmul.f32 %v892_v22, %v3209_v17  ;;  %v917_v30 = vmul.f32 %v893_v5, %v3211_v32  ;;  %v918_v61 = vmul.f32 %v894_v31, %v3213_v47  ;;  %v919_v28 = vmul.f32 %v895_v58, %v4265_v39  ;;  %v4273_v31 = vld [vmem:[#allocation78_spill] sm:$0xff]  ;;  %v4274_v32 = vld [vmem:[#allocation81_spill] sm:$0xff]  ;;  %v4275_v5 = vld [vmem:[#allocation87_spill] sm:$0xff] }
  0xe7   :  { %v920_v27 = vmul.f32 %v896_v25, %v4266_v14  ;;  %v921_v36 = vmul.f32 %v897_v59, %v4267_v9  ;;  %v922_v2 = vmul.f32 %v898_v63, %v4268_v16  ;;  %v3272_v40 = vmul.f32 %v899_v46, %v4269_v43  ;;  %v4276_v10 = vld [vmem:[#allocation92_spill] sm:$0xff]  ;;  %v4277_v24 = vld [vmem:[#allocation91_spill] sm:$0xff]  ;;  %v4278_v57 = vld [vmem:[#allocation93_spill] sm:$0xff] }
  0xe8   :  { %v3275_v3 = vmul.f32 %v900_v20, %v4270_v12  ;;  %v3278_v22 = vmul.f32 %v901_v7, %v4271_v0  ;;  %v3281_v55 = vmul.f32 %v902_v23, %v4272_v53  ;;  %v3284_v17 = vmul.f32 %v903_v29, %v4273_v31  ;;  %v4285_v58 = vld [vmem:[#allocation101_spill] sm:$0xff]  ;;  %v4286_v59 = vld [vmem:[#allocation83_spill] sm:$0xff]  ;;  %v4289_v29 = vld [vmem:[#allocation46_spill] sm:$0xff] }
  0xe9   :  { %v3287_v47 = vmul.f32 %v904_v50, %v4274_v32  ;;  %v3290_v42 = vmul.f32 %v905_v15, %v4275_v5  ;;  %v3293_v13 = vmul.f32 %v906_v44, %v4276_v10  ;;  %v3296_v11 = vmul.f32 %v907_v62, %v4277_v24  ;;  %v4287_v46 = vld [vmem:[#allocation51_spill] sm:$0xff]  ;;  %v4290_v15 = vld [vmem:[#allocation48_spill] sm:$0xff]  ;;  %v4291_v62 = vld [vmem:[#allocation53_spill] sm:$0xff] }
  0xea   :  { %v3299_v33 = vmul.f32 %v908_v45, %v4278_v57  ;;  %v3302_v18 = vmul.f32 %v909_v60, %v4279_v41  ;;  %v3305_v1 = vmul.f32 %v910_v51, %v4280_v4  ;;  %v3308_v38 = vmul.f32 %v911_v6, %v4281_v34  ;;  %v4288_v7 = vld [vmem:[#allocation59_spill] sm:$0xff]  ;;  %v4292_v60 = vld [vmem:[#allocation61_spill] sm:$0xff]  ;;  %v4298_v14 = vld [vmem:[#allocation24_spill] sm:$0xff] }
  0xeb   :  { %v3311_v26 = vmul.f32 %v912_v8, %v4282_v54  ;;  %v3314_v48 = vmul.f32 %v913_v37, %v4283_v49  ;;  %v3317_v35 = vmul.f32 %v914_v19, %v4284_v56  ;;  %v3320_v25 = vmul.f32 %v915_v21, %v4285_v58  ;;  %v4293_v6 = vld [vmem:[#allocation19_spill] sm:$0xff]  ;;  %v4294_v37 = vld [vmem:[#allocation20_spill] sm:$0xff]  ;;  %v4295_v21 = vld [vmem:[#allocation21_spill] sm:$0xff] }
  0xec   :  { %v3323_v63 = vmul.f32 %v916_v52, %v4286_v59  ;;  %v3326_v20 = vmul.f32 %v917_v30, %v4287_v46  ;;  %v3329_v23 = vmul.f32 %v918_v61, %v4288_v7  ;;  %v3332_v50 = vmul.f32 %v919_v28, %v4289_v29  ;;  %v4296_v30 = vld [vmem:[#allocation22_spill] sm:$0xff]  ;;  %v4297_v39 = vld [vmem:[#allocation23_spill] sm:$0xff]  ;;  %v4299_v9 = vld [vmem:[#allocation25_spill] sm:$0xff] }
  0xed   :  { %v3335_v44 = vmul.f32 %v920_v27, %v4290_v15  ;;  %v3338_v45 = vmul.f32 %v921_v36, %v4291_v62  ;;  %v3341_v51 = vmul.f32 %v922_v2, %v4292_v60  ;;  %v947_v8 = vmul.f32 %v4293_v6, %v3272_v40  ;;  %v4300_v16 = vld [vmem:[#allocation26_spill] sm:$0xff]  ;;  %v4301_v43 = vld [vmem:[#allocation27_spill] sm:$0xff]  ;;  %v4302_v0 = vld [vmem:[#allocation28_spill] sm:$0xff] }
  0xee   :  { %v948_v19 = vmul.f32 %v4294_v37, %v3275_v3  ;;  %v949_v52 = vmul.f32 %v4295_v21, %v3278_v22  ;;  %v950_v61 = vmul.f32 %v4296_v30, %v3281_v55  ;;  %v951_v28 = vmul.f32 %v4297_v39, %v3284_v17  ;;  %v4303_v31 = vld [vmem:[#allocation29_spill] sm:$0xff]  ;;  %v4304_v5 = vld [vmem:[#allocation30_spill] sm:$0xff]  ;;  %v4305_v24 = vld [vmem:[#allocation31_spill] sm:$0xff] }
  0xef   :  { %v952_v27 = vmul.f32 %v4298_v14, %v3287_v47  ;;  %v953_v36 = vmul.f32 %v4299_v9, %v3290_v42  ;;  %v954_v2 = vmul.f32 %v4300_v16, %v3293_v13  ;;  %v955_v12 = vmul.f32 %v4301_v43, %v3296_v11  ;;  %v4306_v41 = vld [vmem:[#allocation32_spill] sm:$0xff]  ;;  %v4307_v34 = vld [vmem:[#allocation33_spill] sm:$0xff]  ;;  %v4308_v49 = vld [vmem:[#allocation34_spill] sm:$0xff] }
  0xf0   :  { %v956_v53 = vmul.f32 %v4302_v0, %v3299_v33  ;;  %v957_v32 = vmul.f32 %v4303_v31, %v3302_v18  ;;  %v958_v10 = vmul.f32 %v4304_v5, %v3305_v1  ;;  %v959_v57 = vmul.f32 %v4305_v24, %v3308_v38  ;;  %v4309_v58 = vld [vmem:[#allocation35_spill] sm:$0xff]  ;;  %v4310_v46 = vld [vmem:[#allocation36_spill] sm:$0xff]  ;;  %v4311_v29 = vld [vmem:[#allocation37_spill] sm:$0xff] }
  0xf1   :  { %v960_v4 = vmul.f32 %v4306_v41, %v3311_v26  ;;  %v961_v54 = vmul.f32 %v4307_v34, %v3314_v48  ;;  %v962_v56 = vmul.f32 %v4308_v49, %v3317_v35  ;;  %v963_v59 = vmul.f32 %v4309_v58, %v3320_v25  ;;  %v4312_v62 = vld [vmem:[#allocation38_spill] sm:$0xff]  ;;  %v4313_v6 = vld [vmem:[#allocation39_spill] sm:$0xff]  ;;  %v4314_v21 = vld [vmem:[#allocation40_spill] sm:$0xff] }
  0xf2   :  { %v964_v7 = vmul.f32 %v4310_v46, %v3323_v63  ;;  %v965_v15 = vmul.f32 %v4311_v29, %v3326_v20  ;;  %v966_v60 = vmul.f32 %v4312_v62, %v3329_v23  ;;  %v967_v37 = vmul.f32 %v4313_v6, %v3332_v50  ;;  %v4315_v39 = vld [vmem:[#allocation41_spill] sm:$0xff]  ;;  %v4316_v9 = vld [vmem:[#allocation42_spill] sm:$0xff] }
  0xf3   :  { %v968_v30 = vmul.f32 %v4314_v21, %v3335_v44  ;;  %v969_v14 = vmul.f32 %v4315_v39, %v3338_v45  ;;  %v970_v16 = vmul.f32 %v4316_v9, %v3341_v51  ;;  %v971_v43 = vadd.f32 %v955_v12, %v947_v8 }
  0xf4   :  { %vm972_vm5 = vcmask 1043456   ;;  %v981_v0 = vadd.f32 %v956_v53, %v948_v19  ;;  %v990_v31 = vadd.f32 %v957_v32, %v949_v52  ;;  %v999_v5 = vadd.f32 %v958_v10, %v950_v61 }
  0xf5   :  { %v973_v24 = vsel %vm972_vm5, %v963_v59, 0.0  ;;  %v982_v41 = vsel %vm972_vm5, %v964_v7, 0.0  ;;  %v991_v34 = vsel %vm972_vm5, %v965_v15, 0.0  ;;  %v1000_v49 = vsel %vm972_vm5, %v966_v60, 0.0 }
  0xf6   :  { %v974_v58 = vadd.f32 %v973_v24, %v971_v43  ;;  %v983_v46 = vadd.f32 %v982_v41, %v981_v0  ;;  %v992_v29 = vadd.f32 %v991_v34, %v990_v31  ;;  %v1001_v62 = vadd.f32 %v1000_v49, %v999_v5 }
  0xf7   :  { %v1008_v6 = vadd.f32 %v959_v57, %v951_v28  ;;  %v1009_v21 = vsel %vm972_vm5, %v967_v37, 0.0  ;;  %v1017_v8 = vadd.f32 %v960_v4, %v952_v27  ;;  %v1018_v19 = vsel %vm972_vm5, %v968_v30, 0.0 }
  0xf8   :  { %v975_v52 = vrot.slane %v974_v58, 4  ;;  %v984_v61 = vrot.slane %v983_v46, 4  ;;  %v993_v12 = vrot.slane %v992_v29, 4  ;;  %v1002_v53 = vrot.slane %v1001_v62, 4 }
  0xf9   :  { %v1010_v32 = vadd.f32 %v1009_v21, %v1008_v6  ;;  %v1019_v10 = vadd.f32 %v1018_v19, %v1017_v8  ;;  %v1026_v59 = vadd.f32 %v961_v54, %v953_v36  ;;  %v1027_v7 = vsel %vm972_vm5, %v969_v14, 0.0 }
  0xfa   :  { %v976_v15 = vadd.f32 %v975_v52, %v974_v58  ;;  %v985_v60 = vadd.f32 %v984_v61, %v983_v46  ;;  %v994_v39 = vadd.f32 %v993_v12, %v992_v29  ;;  %v1003_v9 = vadd.f32 %v1002_v53, %v1001_v62 }
  0xfb   :  { %v1011_v43 = vrot.slane %v1010_v32, 4  ;;  %v1020_v28 = vrot.slane %v1019_v10, 4  ;;  %v1028_v57 = vadd.f32 %v1027_v7, %v1026_v59  ;;  %v1035_v37 = vadd.f32 %v962_v56, %v954_v2 }
  0xfc   :  { %v977_v27 = vrot.slane %v976_v15, 2  ;;  %v986_v4 = vrot.slane %v985_v60, 2  ;;  %v995_v30 = vrot.slane %v994_v39, 2  ;;  %v1004_v0 = vrot.slane %v1003_v9, 2 }
  0xfd   :  { %v1012_v31 = vadd.f32 %v1011_v43, %v1010_v32  ;;  %v1021_v5 = vadd.f32 %v1020_v28, %v1019_v10  ;;  %v1029_v24 = vrot.slane %v1028_v57, 4  ;;  %v1036_v41 = vsel %vm972_vm5, %v970_v16, 0.0 }
  0xfe   :  { %v978_v36 = vadd.f32 %v977_v27, %v976_v15  ;;  %v987_v54 = vadd.f32 %v986_v4, %v985_v60  ;;  %v996_v14 = vadd.f32 %v995_v30, %v994_v39  ;;  %v1005_v34 = vadd.f32 %v1004_v0, %v1003_v9 }
  0xff   :  { %v1013_v49 = vrot.slane %v1012_v31, 2  ;;  %v1022_v58 = vrot.slane %v1021_v5, 2  ;;  %v1030_v46 = vadd.f32 %v1029_v24, %v1028_v57  ;;  %v1037_v29 = vadd.f32 %v1036_v41, %v1035_v37 }
 0x100   :  { %v979_v62 = vrot.slane %v978_v36, 1  ;;  %v988_v6 = vrot.slane %v987_v54, 1  ;;  %v997_v2 = vrot.slane %v996_v14, 1  ;;  %v1006_v56 = vrot.slane %v1005_v34, 1 }
 0x101   :  { %v1014_v21 = vadd.f32 %v1013_v49, %v1012_v31  ;;  %v1023_v8 = vadd.f32 %v1022_v58, %v1021_v5  ;;  %v1031_v19 = vrot.slane %v1030_v46, 2  ;;  %v1038_v52 = vrot.slane %v1037_v29, 4 }
 0x102   :  { %v3399_v61 = vadd.f32 %v979_v62, %v978_v36  ;;  %v3401_v12 = vadd.f32 %v988_v6, %v987_v54  ;;  %v3403_v16 = vadd.f32 %v997_v2, %v996_v14  ;;  %v3405_v53 = vadd.f32 %v1006_v56, %v1005_v34 }
 0x103   :  { %v1015_v32 = vrot.slane %v1014_v21, 1  ;;  %v1024_v10 = vrot.slane %v1023_v8, 1  ;;  %v1032_v59 = vadd.f32 %v1031_v19, %v1030_v46  ;;  %v1039_v7 = vadd.f32 %v1038_v52, %v1037_v29 }
 0x104   :  { %v1044_v15 = vadd.f32 %v3296_v11, %v3272_v40  ;;  %v1045_v60 = vsel %vm972_vm5, %v3320_v25, 0.0  ;;  %v1053_v39 = vadd.f32 %v3299_v33, %v3275_v3  ;;  %v1054_v9 = vsel %vm972_vm5, %v3323_v63, 0.0 }
 0x105   :  { %v3415_v43 = vadd.f32 %v1015_v32, %v1014_v21  ;;  %v3417_v28 = vadd.f32 %v1024_v10, %v1023_v8  ;;  %v1033_v57 = vrot.slane %v1032_v59, 1  ;;  %v1040_v37 = vrot.slane %v1039_v7, 2  ;;  %v89_v32 = vld [vmem:[#allocation5 + $0x1] ss:$4 sm:$0xff] }
 0x106   :  { %v1046_v27 = vadd.f32 %v1045_v60, %v1044_v15  ;;  %v1055_v4 = vadd.f32 %v1054_v9, %v1053_v39  ;;  %v1062_v40 = vadd.f32 %v3302_v18, %v3278_v22  ;;  %v1063_v11 = vsel %vm972_vm5, %v3326_v20, 0.0 }
 0x107   :  { %v3423_v25 = vadd.f32 %v1033_v57, %v1032_v59  ;;  %v1041_v3 = vadd.f32 %v1040_v37, %v1039_v7  ;;  %v1071_v33 = vadd.f32 %v3305_v1, %v3281_v55  ;;  %v1072_v63 = vsel %vm972_vm5, %v3329_v23, 0.0 }
 0x108   :  { %v1047_v30 = vrot.slane %v1046_v27, 4  ;;  %v1056_v0 = vrot.slane %v1055_v4, 4  ;;  %v1064_v31 = vadd.f32 %v1063_v11, %v1062_v40  ;;  %v1080_v5 = vadd.f32 %v3308_v38, %v3284_v17  ;;  %v4319_v11 = vld [vmem:[#allocation11_spill] sm:$0xff] }
 0x109   :  { %4317 = vst [vmem:[#allocation65_spill] sm:$0xff] %v3423_v25  ;;  %v1042_v24 = vrot.slane %v1041_v3, 1  ;;  %v1073_v22 = vadd.f32 %v1072_v63, %v1071_v33  ;;  %v1081_v18 = vsel %vm972_vm5, %v3332_v50, 0.0  ;;  %v1089_v20 = vadd.f32 %v3311_v26, %v3287_v47 }
 0x10a   :  { %v1048_v41 = vadd.f32 %v1047_v30, %v1046_v27  ;;  %v1057_v36 = vadd.f32 %v1056_v0, %v1055_v4  ;;  %v1065_v55 = vrot.slane %v1064_v31, 4  ;;  %v1082_v1 = vadd.f32 %v1081_v18, %v1080_v5  ;;  %v4321_v18 = vld [vmem:[#allocation13_spill] sm:$0xff] }
 0x10b   :  { %v1043_v54 = vadd.f32 %v1042_v24, %v1041_v3  ;;  %v1074_v23 = vrot.slane %v1073_v22, 4  ;;  %v1090_v14 = vsel %vm972_vm5, %v3335_v44, 0.0  ;;  %v1098_v17 = vadd.f32 %v3314_v48, %v3290_v42  ;;  %v4320_v24 = vld [vmem:[#allocation12_spill] sm:$0xff] }
 0x10c   :  { %v1049_v38 = vrot.slane %v1048_v41, 2  ;;  %v1058_v34 = vrot.slane %v1057_v36, 2  ;;  %v1066_v49 = vadd.f32 %v1065_v55, %v1064_v31  ;;  %v1083_v58 = vrot.slane %v1082_v1, 4 }
 0x10d   :  { %v1075_v50 = vadd.f32 %v1074_v23, %v1073_v22  ;;  %v1091_v46 = vadd.f32 %v1090_v14, %v1089_v20  ;;  %v1099_v47 = vsel %vm972_vm5, %v3338_v45, 0.0  ;;  %v1107_v26 = vadd.f32 %v3317_v35, %v3293_v13  ;;  %v4322_v23 = vld [vmem:[#allocation14_spill] sm:$0xff] }
 0x10e   :  { %v1050_v29 = vadd.f32 %v1049_v38, %v1048_v41  ;;  %v1059_v62 = vadd.f32 %v1058_v34, %v1057_v36  ;;  %v1067_v6 = vrot.slane %v1066_v49, 2  ;;  %v1084_v2 = vadd.f32 %v1083_v58, %v1082_v1  ;;  %v91_v41 = vld [vmem:[#allocation5 + $0x2] ss:$4 sm:$0xff] }
 0x10f   :  { %v1076_v44 = vrot.slane %v1075_v50, 2  ;;  %v1092_v56 = vrot.slane %v1091_v46, 4  ;;  %v1100_v21 = vadd.f32 %v1099_v47, %v1098_v17  ;;  %v1108_v42 = vsel %vm972_vm5, %v3341_v51, 0.0  ;;  %v4323_v17 = vld [vmem:[#allocation15_spill] sm:$0xff]  ;;  %v4324_v34 = vld [vmem:[#allocation16_spill] sm:$0xff]  ;;  %v4325_v58 = vld [vmem:[#allocation17_spill] sm:$0xff] }
 0x110   :  { %v1051_v48 = vrot.slane %v1050_v29, 1  ;;  %v1060_v8 = vrot.slane %v1059_v62, 1  ;;  %v1068_v19 = vadd.f32 %v1067_v6, %v1066_v49  ;;  %v1085_v52 = vrot.slane %v1084_v2, 2 }
 0x111   :  { %v1077_v10 = vadd.f32 %v1076_v44, %v1075_v50  ;;  %v1093_v45 = vadd.f32 %v1092_v56, %v1091_v46  ;;  %v1101_v59 = vrot.slane %v1100_v21, 4  ;;  %v1109_v7 = vadd.f32 %v1108_v42, %v1107_v26 }
 0x112   :  { %v3445_v13 = vadd.f32 %v1051_v48, %v1050_v29  ;;  %v3447_v35 = vadd.f32 %v1060_v8, %v1059_v62  ;;  %v1069_v15 = vrot.slane %v1068_v19, 1  ;;  %v1086_v60 = vadd.f32 %v1085_v52, %v1084_v2  ;;  %v4327_v62 = vld [vmem:[#allocation18_spill] sm:$0xff] }
 0x113   :  { %v1078_v39 = vrot.slane %v1077_v10, 1  ;;  %v1094_v9 = vrot.slane %v1093_v45, 2  ;;  %v1102_v57 = vadd.f32 %v1101_v59, %v1100_v21  ;;  %v1110_v37 = vrot.slane %v1109_v7, 4 }
 0x114   :  { %v3449_v51 = vadd.f32 %v1069_v15, %v1068_v19  ;;  %v1087_v27 = vrot.slane %v1086_v60, 1  ;;  %v4318_v4 = vlaneseq  ;;  %v1164_v3 = vrot.slane %v89_v32, %v4319_v11 }
 0x115   :  { %v3453_v33 = vadd.f32 %v1078_v39, %v1077_v10  ;;  %v1095_v63 = vadd.f32 %v1094_v9, %v1093_v45  ;;  %v1103_v30 = vrot.slane %v1102_v57, 2  ;;  %v1111_v0 = vadd.f32 %v1110_v37, %v1109_v7 }
 0x116   :  { %v1119_v40 = vand.u32 127, %v4318_v4  ;;  %v1088_v31 = vadd.f32 %v1087_v27, %v1086_v60  ;;  %v1168_v22 = vrot.slane %v89_v32, %v4320_v24  ;;  %v1172_v20 = vrot.slane %v89_v32, %v4321_v18 }
 0x117   :  { %v1096_v36 = vrot.slane %v1095_v63, 1  ;;  %v1104_v55 = vadd.f32 %v1103_v30, %v1102_v57  ;;  %v1112_v1 = vrot.slane %v1111_v0, 2  ;;  %v1176_v14 = vrot.slane %v89_v32, %v4322_v23 }
 0x118   :  { %v1126_v5 = vadd.s32 896, %v1119_v40  ;;  %v1180_v38 = vrot.slane %v89_v32, %v4323_v17  ;;  %v1184_v49 = vrot.slane %v89_v32, %v4324_v34  ;;  %v1188_v50 = vrot.slane %v89_v32, %v4325_v58 }
 0x119   :  { %v1097_v46 = vadd.f32 %v1096_v36, %v1095_v63  ;;  %v1105_v47 = vrot.slane %v1104_v55, 1  ;;  %v1113_v26 = vadd.f32 %v1112_v1, %v1111_v0  ;;  %v1192_v6 = vrot.slane %v89_v32, %v4327_v62 }
 0x11a   :  { %vm1143_vm6 = vcmp.lt.s32.totalorder %v1126_v5, 1000  ;;  %v1213_v2 = vrot.slane %v91_v41, %v4319_v11  ;;  %v1217_v44 = vrot.slane %v91_v41, %v4320_v24  ;;  %v1221_v56 = vrot.slane %v91_v41, %v4321_v18 }
 0x11b   :  { %v3462_v29 = vsel %vm1143_vm6, %v1043_v54, 0.0  ;;  %v1106_v21 = vadd.f32 %v1105_v47, %v1104_v55  ;;  %v1114_v42 = vrot.slane %v1113_v26, 1  ;;  %v1225_v48 = vrot.slane %v91_v41, %v4322_v23 }
 0x11c   :  { %4326 = vst [vmem:[#allocation79_spill] sm:$0xff] %v3462_v29  ;;  %v1229_v8 = vrot.slane %v91_v41, %v4323_v17  ;;  %v1208_v19 = vsel %vm1143_vm6, %v1192_v6, 0.0  ;;  %v1233_v52 = vrot.slane %v91_v41, %v4324_v34  ;;  %v1237_v54 = vrot.slane %v91_v41, %v4325_v58 }
 0x11d   :  { %v1241_v32 = vrot.slane %v91_v41, %v4327_v62  ;;  %v1115_v10 = vadd.f32 %v1114_v42, %v1113_v26  ;;  %v3475_v45 = vmul.f32 %v1213_v2, %v3399_v61  ;;  %v3478_v59 = vmul.f32 %v1217_v44, %v3401_v12 }
 0x11e   :  { %v3481_v7 = vmul.f32 %v1221_v56, %v3403_v16  ;;  %v3485_v60 = vmul.f32 %v1225_v48, %v3405_v53  ;;  %v3488_v39 = vmul.f32 %v1229_v8, %v3415_v43  ;;  %v3491_v9 = vmul.f32 %v1233_v52, %v3417_v28 }
 0x11f   :  { %v1257_v15 = vsel %vm1143_vm6, %v1241_v32, 0.0  ;;  %v1159_v57 = vsel %vm1143_vm6, %v1115_v10, 0.0  ;;  %v3495_v37 = vmul.f32 %v1237_v54, %v3423_v25  ;;  %v3501_v4 = vmul.f32 %v3475_v45, %v1164_v3 }
 0x120   :  { %v3498_v27 = vmul.f32 %v1257_v15, %v3462_v29  ;;  %v3504_v40 = vmul.f32 %v3478_v59, %v1168_v22  ;;  %v3507_v11 = vmul.f32 %v3481_v7, %v1172_v20  ;;  %v3510_v63 = vmul.f32 %v3485_v60, %v1176_v14 }
 0x121   :  { %v3513_v30 = vmul.f32 %v3488_v39, %v1180_v38  ;;  %v3516_v0 = vmul.f32 %v3491_v9, %v1184_v49  ;;  %v3519_v5 = vmul.f32 %v3495_v37, %v1188_v50  ;;  %v1274_v18 = vsub.f32 %v3445_v13, %v3399_v61 }
 0x122   :  { %v3522_v24 = vmul.f32 %v3498_v27, %v1208_v19  ;;  %v1275_v41 = vsub.f32 %v3447_v35, %v3401_v12  ;;  %v1276_v36 = vsub.f32 %v3449_v51, %v3403_v16  ;;  %v1277_v55 = vsub.f32 %v3453_v33, %v3405_v53 }
 0x123   :  { %v1278_v1 = vsub.f32 %v1088_v31, %v3415_v43  ;;  %v1279_v23 = vsub.f32 %v1097_v46, %v3417_v28  ;;  %v1280_v17 = vsub.f32 %v1106_v21, %v3423_v25  ;;  %v1281_v34 = vsub.f32 %v1159_v57, %v3462_v29 }
 0x124   :  { %v3536_v58 = vmul.f32 %v1274_v18, %v1164_v3  ;;  %v3538_v13 = vmul.f32 %v1275_v41, %v1168_v22  ;;  %v3540_v47 = vmul.f32 %v1276_v36, %v1172_v20  ;;  %v3542_v35 = vmul.f32 %v1277_v55, %v1176_v14 }
 0x125   :  { %v3544_v51 = vmul.f32 %v1278_v1, %v1180_v38  ;;  %v3546_v26 = vmul.f32 %v1279_v23, %v1184_v49  ;;  %v3548_v33 = vmul.f32 %v1280_v17, %v1188_v50  ;;  %v3550_v31 = vmul.f32 %v1281_v34, %v1208_v19 }
 0x126   :  { %4328 = vst [vmem:[#allocation82_spill] sm:$0xff] %v3540_v47  ;;  %4329 = vst [vmem:[#allocation105_spill] sm:$0xff] %v3542_v35  ;;  %v1298_v46 = vrot.slane %v3475_v45, 7  ;;  %v1299_v62 = vrot.slane %v3478_v59, 7  ;;  %v1300_v3 = vrot.slane %v3481_v7, 7  ;;  %v1301_v22 = vrot.slane %v3485_v60, 7 }
 0x127   :  { %4330 = vst [vmem:[#allocation84_spill] sm:$0xff] %v3544_v51  ;;  %4331 = vst [vmem:[#allocation85_spill] sm:$0xff] %v3546_v26  ;;  %v1302_v20 = vrot.slane %v3488_v39, 7  ;;  %v1303_v14 = vrot.slane %v3491_v9, 7  ;;  %v1304_v38 = vrot.slane %v3495_v37, 7  ;;  %v1305_v49 = vrot.slane %v3498_v27, 7 }
 0x128   :  { %4332 = vst [vmem:[#allocation86_spill] sm:$0xff] %v3548_v33  ;;  %4333 = vst [vmem:[#allocation107_spill] sm:$0xff] %v3550_v31  ;;  %v1322_v50 = vrot.slane %v3501_v4, 6  ;;  %v1323_v6 = vrot.slane %v3504_v40, 6  ;;  %v1324_v2 = vrot.slane %v3507_v11, 6  ;;  %v1325_v44 = vrot.slane %v3510_v63, 6 }
 0x129   :  { %v1326_v56 = vrot.slane %v3513_v30, 6  ;;  %v1327_v21 = vrot.slane %v3516_v0, 6  ;;  %v1328_v42 = vrot.slane %v3519_v5, 6  ;;  %v1329_v48 = vrot.slane %v3522_v24, 6 }
 0x12a   :  { %v1346_v8 = vrot.slane %v3536_v58, 5  ;;  %v1347_v19 = vrot.slane %v3538_v13, 5  ;;  %v1348_v52 = vrot.slane %v3540_v47, 5  ;;  %v1349_v54 = vrot.slane %v3542_v35, 5 }
 0x12b   :  { %v1350_v32 = vrot.slane %v3544_v51, 5  ;;  %v1351_v10 = vrot.slane %v3546_v26, 5  ;;  %v1352_v15 = vrot.slane %v3548_v33, 5  ;;  %v1353_v57 = vrot.slane %v3550_v31, 5 }
 0x12c   :  { %v1362_v18 = vrot.slane %v3475_v45, 3  ;;  %v1363_v41 = vrot.slane %v3478_v59, 3  ;;  %v1364_v36 = vrot.slane %v3481_v7, 3  ;;  %v1365_v55 = vrot.slane %v3485_v60, 3 }
 0x12d   :  { %v1366_v1 = vrot.slane %v3488_v39, 3  ;;  %v1367_v23 = vrot.slane %v3491_v9, 3  ;;  %v1368_v17 = vrot.slane %v3495_v37, 3  ;;  %v1369_v34 = vrot.slane %v3498_v27, 3 }
 0x12e   :  { %v1378_v29 = vrot.slane %v3501_v4, 2  ;;  %v1379_v25 = vrot.slane %v3504_v40, 2  ;;  %v1380_v45 = vrot.slane %v3507_v11, 2  ;;  %v1381_v59 = vrot.slane %v3510_v63, 2  ;;  %v4334_v11 = vld [vmem:[#allocation65_spill] sm:$0xff]  ;;  %v4335_v63 = vld [vmem:[#allocation79_spill] sm:$0xff] }
 0x12f   :  { %v1382_v7 = vrot.slane %v3513_v30, 2  ;;  %v1383_v60 = vrot.slane %v3516_v0, 2  ;;  %v1384_v39 = vrot.slane %v3519_v5, 2  ;;  %v1385_v9 = vrot.slane %v3522_v24, 2 }
 0x130   :  { %vm1410_vm7 = vcmask 1040384   ;;  %vm1419_vm8 = vcmask 1041408   ;;  %vm1428_vm9 = vcmask 1042432   ;;  %vm1445_vm10 = vcmask 1044480  }
 0x131   :  { %v1411_v5 = vsel %vm1410_vm7, %v3399_v61, %v1298_v46  ;;  %v1412_v24 = vsel %vm1410_vm7, %v3401_v12, %v1299_v62  ;;  %v1413_v37 = vsel %vm1410_vm7, %v3403_v16, %v1300_v3  ;;  %v1414_v27 = vsel %vm1410_vm7, %v3405_v53, %v1301_v22 }
 0x132   :  { %v1415_v4 = vsel %vm1410_vm7, %v3415_v43, %v1302_v20  ;;  %v1416_v40 = vsel %vm1410_vm7, %v3417_v28, %v1303_v14  ;;  %v1417_v51 = vsel %vm1410_vm7, %v4334_v11, %v1304_v38  ;;  %v1418_v26 = vsel %vm1410_vm7, %v4335_v63, %v1305_v49 }
 0x133   :  { %vm1454_vm11 = vcmask 1045504   ;;  %v1420_v0 = vsel %vm1419_vm8, %v1411_v5, %v1322_v50  ;;  %v1421_v46 = vsel %vm1419_vm8, %v1412_v24, %v1323_v6  ;;  %v1422_v30 = vsel %vm1419_vm8, %v1413_v37, %v1324_v2  ;;  %v4348_v37 = vld [vmem:[#allocation107_spill] sm:$0xff] }
 0x134   :  { %v1423_v62 = vsel %vm1419_vm8, %v1414_v27, %v1325_v44  ;;  %v1424_v31 = vsel %vm1419_vm8, %v1415_v4, %v1326_v56  ;;  %v1425_v3 = vsel %vm1419_vm8, %v1416_v40, %v1327_v21  ;;  %v1426_v33 = vsel %vm1419_vm8, %v1417_v51, %v1328_v42 }
 0x135   :  { %v1427_v22 = vsel %vm1419_vm8, %v1418_v26, %v1329_v48  ;;  %v1429_v20 = vsel %vm1428_vm9, %v1420_v0, %v1346_v8  ;;  %v1430_v14 = vsel %vm1428_vm9, %v1421_v46, %v1347_v19  ;;  %v1431_v38 = vsel %vm1428_vm9, %v1422_v30, %v1348_v52 }
 0x136   :  { %v1432_v49 = vsel %vm1428_vm9, %v1423_v62, %v1349_v54  ;;  %v1433_v35 = vsel %vm1428_vm9, %v1424_v31, %v1350_v32  ;;  %v1434_v47 = vsel %vm1428_vm9, %v1425_v3, %v1351_v10  ;;  %v1435_v50 = vsel %vm1428_vm9, %v1426_v33, %v1352_v15 }
 0x137   :  { %v1436_v6 = vsel %vm1428_vm9, %v1427_v22, %v1353_v57  ;;  %v1437_v51 = vsel %vm972_vm5, %v1429_v20, %v3399_v61  ;;  %v1438_v26 = vsel %vm972_vm5, %v1430_v14, %v3401_v12  ;;  %v1439_v2 = vsel %vm972_vm5, %v1431_v38, %v3403_v16 }
 0x138   :  { %v1440_v44 = vsel %vm972_vm5, %v1432_v49, %v3405_v53  ;;  %v1441_v31 = vsel %vm972_vm5, %v1433_v35, %v3415_v43  ;;  %v1442_v33 = vsel %vm972_vm5, %v1434_v47, %v3417_v28  ;;  %v1443_v56 = vsel %vm972_vm5, %v1435_v50, %v4334_v11 }
 0x139   :  { %v1444_v61 = vsel %vm972_vm5, %v1436_v6, %v4335_v63  ;;  %v1446_v12 = vsel %vm1445_vm10, %v1437_v51, %v1362_v18  ;;  %v1447_v21 = vsel %vm1445_vm10, %v1438_v26, %v1363_v41  ;;  %v1448_v16 = vsel %vm1445_vm10, %v1439_v2, %v1364_v36 }
 0x13a   :  { %v1449_v53 = vsel %vm1445_vm10, %v1440_v44, %v1365_v55  ;;  %v1450_v42 = vsel %vm1445_vm10, %v1441_v31, %v1366_v1  ;;  %v1451_v43 = vsel %vm1445_vm10, %v1442_v33, %v1367_v23  ;;  %v1452_v28 = vsel %vm1445_vm10, %v1443_v56, %v1368_v17  ;;  %v4340_v55 = vld [vmem:[#allocation105_spill] sm:$0xff]  ;;  %v4342_v17 = vld [vmem:[#allocation84_spill] sm:$0xff] }
 0x13b   :  { %v1453_v47 = vsel %vm1445_vm10, %v1444_v61, %v1369_v34  ;;  %v1455_v35 = vsel %vm1454_vm11, %v1446_v12, %v1378_v29  ;;  %v1456_v48 = vsel %vm1454_vm11, %v1447_v21, %v1379_v25  ;;  %v1457_v8 = vsel %vm1454_vm11, %v1448_v16, %v1380_v45  ;;  %v4338_v25 = vld [vmem:[#allocation82_spill] sm:$0xff] }
 0x13c   :  { %v1458_v19 = vsel %vm1454_vm11, %v1449_v53, %v1381_v59  ;;  %v1459_v52 = vsel %vm1454_vm11, %v1450_v42, %v1382_v7  ;;  %v1460_v54 = vsel %vm1454_vm11, %v1451_v43, %v1383_v60  ;;  %v1461_v32 = vsel %vm1454_vm11, %v1452_v28, %v1384_v39  ;;  %v4344_v59 = vld [vmem:[#allocation85_spill] sm:$0xff]  ;;  %v4346_v39 = vld [vmem:[#allocation86_spill] sm:$0xff] }
 0x13d   :  { %v1462_v10 = vsel %vm1454_vm11, %v1453_v47, %v1385_v9  ;;  %vm1463_vm15 = vcmask 1046528   ;;  %v4336_v15 = vrot.slane %v3536_v58, 1  ;;  %v4337_v29 = vrot.slane %v3538_v13, 1 }
 0x13e   :  { %v4339_v41 = vrot.slane %v4338_v25, 1  ;;  %v4341_v1 = vrot.slane %v4340_v55, 1  ;;  %v4343_v34 = vrot.slane %v4342_v17, 1  ;;  %v4345_v7 = vrot.slane %v4344_v59, 1 }
 0x13f   :  { %v1464_v57 = vsel %vm1463_vm15, %v1455_v35, %v4336_v15  ;;  %v1465_v18 = vsel %vm1463_vm15, %v1456_v48, %v4337_v29  ;;  %v4347_v58 = vrot.slane %v4346_v39, 1  ;;  %v4349_v13 = vrot.slane %v4348_v37, 1 }
 0x140   :  { %v1466_v36 = vsel %vm1463_vm15, %v1457_v8, %v4339_v41  ;;  %v1467_v23 = vsel %vm1463_vm15, %v1458_v19, %v4341_v1  ;;  %v1468_v45 = vsel %vm1463_vm15, %v1459_v52, %v4343_v34  ;;  %v1469_v60 = vsel %vm1463_vm15, %v1460_v54, %v4345_v7  ;;  %1488 = vst [vmem:[#allocation7] sm:$0xff] %v1464_v57 }
 0x141   :  { %v1470_v9 = vsel %vm1463_vm15, %v1461_v32, %v4347_v58  ;;  %v1471_v27 = vsel %vm1463_vm15, %v1462_v10, %v4349_v13  ;;  %1489 = vst [vmem:[#allocation7 + $0x8] sm:$0xff] %v1465_v18  ;;  %1490 = vst [vmem:[#allocation7 + $0x10] sm:$0xff] %v1466_v36 }
 0x142   :  { %1491 = vst [vmem:[#allocation7 + $0x18] sm:$0xff] %v1467_v23  ;;  %1492 = vst [vmem:[#allocation7 + $0x20] sm:$0xff] %v1468_v45 }
 0x143   :  { %1493 = vst [vmem:[#allocation7 + $0x28] sm:$0xff] %v1469_v60  ;;  %1494 = vst [vmem:[#allocation7 + $0x30] sm:$0xff] %v1470_v9 }
 0x144   :  { %1495 = vst [vmem:[#allocation7 + $0x38] sm:$0xff] %v1471_v27 }
 0x145   :  { %1739 = shalt.err (!%p1736_p0)
}
 0x146   :  { %1505 = dma.vmem_to_hbm [thread:$0]  %s1503_s1, 1024, %s3669_s2, [#allocation4]  }
 0x147   :  { %1752 = dma.done.wait [#allocation4], 1024  }
 0x148   :  { %1753 = vsyncadd [#allocation4], 4294966272 }
 0x149   :  { %1509 = vsyncpa [#allocation3], 1 }
 0x14a   :  { %1510 = vsyncpa [#allocation6], 1 }
 0x14b   :  { %1511 = vsyncpa [#allocation4], 1 }

</bundles_post_ra>
